<compile_context>
chip_gen: v7x
topology: tpu7x:2x2x1
jax: 0.10.0
libtpu: 0.0.40
codegen_flags: <defaults>
</compile_context>

<pallas_src>
import functools

import numpy as np
import jax
import jax.numpy as jnp
from jax import lax
from jax.experimental import pallas as pl
from jax.experimental.pallas import tpu as pltpu

_BN_EPS = 1e-5


def _skipblock_kernel(x_ref, pool_ref, w1_ref, b1_ref, sel_ref, dw_ref, b2_ref,
                      w2_ref, b3_ref, o_ref, *, identity):
    """Fused SkipBlock core for one grid step of `nb` batch elements.

    x_ref   : (nb, Cin, Hin*Win)     raw NCHW rows, spatial flattened on lanes
    pool_ref: (Hin*Win, S*S)         adaptive-avg-pool matrix (bf16 when exact)
    w1_ref  : (hidden, Cin)          1x1 conv #1, BN1 scale folded in
    b1_ref  : (hidden, 1)            BN1 bias column
    sel_ref : (k*k*S*S, Ho*Wo)       tap-major flattened 0/1 spatial selection (bf16)
    dw_ref  : (k*k, nb*hidden, 1)    depthwise taps, BN2 scale folded, tiled over batch
    b2_ref  : (nb*hidden, 1)         BN2 bias column, tiled over batch
    w2_ref  : (Cout, hidden)         1x1 conv #2, BN3 scale folded in
    b3_ref  : (Cout, 1)              BN3 bias column
    o_ref   : (Cout, nb*Ho*Wo)       lane-dense channel-major output slab
    """
    nb = x_ref.shape[0]
    hidden = w1_ref.shape[0]
    kk = dw_ref.shape[0]

    pool = pool_ref[...].astype(jnp.float32)
    sel = sel_ref[...].astype(jnp.float32)
    w1 = w1_ref[...]
    b1 = b1_ref[...]
    dwv = dw_ref[...]                 # hoisted: loaded once, indexed per tap below
    w2 = w2_ref[...]
    b3 = b3_ref[...]

    # ---- adaptive avg-pool + 1x1 conv #1 (BN1 folded) + ReLU, per batch element ----
    # Everything stays in vregs: no VMEM scratch round-trip, no masked partial stores.
    xp_list, y_list = [], []
    for n in range(nb):
        xp_n = jnp.dot(x_ref[n], pool, preferred_element_type=jnp.float32)    # (Cin, Q)
        y_n = jnp.maximum(
            jnp.dot(w1, xp_n, preferred_element_type=jnp.float32) + b1, 0.0)  # (hidden, Q)
        xp_list.append(xp_n)
        y_list.append(y_n)
    y_all = jnp.concatenate(y_list, axis=0)           # (nb*hidden, Q)  batch on sublanes

    # ---- depthwise kxk conv as ONE big-K MXU matmul ----
    # Pre-scale y by each BN2-folded tap weight (VPU), concatenate the k*k scaled copies
    # along the contraction axis, contract once against the batch-independent 0/1
    # selection matrix (stride / zero-padding baked in host-side).
    y_taps = jnp.concatenate([y_all * dwv[t] for t in range(kk)], axis=1)  # (nb*h, kk*Q)
    z = jnp.dot(y_taps, sel, preferred_element_type=jnp.float32)           # (nb*h, Qo)
    z = jnp.maximum(z + b2_ref[...], 0.0)

    # ---- 1x1 conv #2 (BN3 folded) + bias (+ identity) -> lane-dense output slab ----
    o_list = []
    for n in range(nb):
        z_n = z[n * hidden:(n + 1) * hidden]          # (hidden, Qo) sublane-aligned slice
        o_n = jnp.dot(w2, z_n, preferred_element_type=jnp.float32) + b3
        if identity:                                  # stride == 1 and Cin == Cout
            o_n = o_n + xp_list[n]
        o_list.append(o_n)
    o_ref[...] = jnp.concatenate(o_list, axis=1).astype(o_ref.dtype)


def _pool_matrix(hin, win, s):
    """(Hin*Win, S*S) uniform-bin averaging matrix (adaptive pool, divisible sizes)."""
    bh, bw = hin // s, win // s
    p = np.zeros((hin * win, s * s), np.float32)
    inv = 1.0 / float(bh * bw)
    for a in range(s):
        for b in range(s):
            for dh in range(bh):
                for dv in range(bw):
                    p[(a * bh + dh) * win + (b * bw + dv), a * s + b] = inv
    return p


def _dw_selection(s, k, stride):
    """(k*k, S*S, Ho*Wo) batch-independent 0/1 tap-selection matrices (stride/pad baked)."""
    pad = (k - 1) // 2
    so = (s + 2 * pad - k) // stride + 1
    sel = np.zeros((k * k, s * s, so * so), np.float32)
    for i in range(k):
        for j in range(k):
            for a in range(so):
                for b in range(so):
                    h = a * stride + i - pad
                    w = b * stride + j - pad
                    if 0 <= h < s and 0 <= w < s:
                        sel[i * k + j, h * s + w, a * so + b] = 1.0
    return sel, so


def _fold_bn(gamma, beta, mean, var):
    scale = gamma / jnp.sqrt(var + _BN_EPS)
    bias = beta - mean * scale
    return scale, bias


def _pick_batch_block(n, qo):
    """Smallest divisor nb of n giving a lane-dense output slab (nb*qo % 128 == 0);
    otherwise the whole batch in one step (block == full array, always legal)."""
    for d in range(1, n):
        if n % d == 0 and (d * qo) % 128 == 0:
            return d
    return n


@functools.partial(jax.jit,
                   static_argnames=("kernel_size", "stride", "size", "batch_block"))
def skip_block(x_nchw, w1, bn1, dw, bn2, w2, bn3, *, kernel_size, stride, size,
               batch_block=None):
    """SkipBlock.forward.  x_nchw: (N, Cin, Hin, Win) float32 (PyTorch layout)."""
    N, Cin, Hin, Win = x_nchw.shape
    S = size
    assert stride in (1, 2)
    assert Hin % S == 0 and Win % S == 0, "adaptive pool assumes divisible sizes"

    hidden = w1.shape[0]
    Cout = w2.shape[0]
    kk = kernel_size * kernel_size
    identity = (stride == 1) and (Cin == Cout)

    pad = (kernel_size - 1) // 2
    So = (S + 2 * pad - kernel_size) // stride + 1
    R, Q, Qo = Hin * Win, S * S, So * So

    nb = _pick_batch_block(N, Qo) if batch_block is None else batch_block
    assert N % nb == 0
    assert nb == N or (nb * Qo) % 128 == 0, "batch_block must keep output lane-aligned"

    # Fold BN running-stat scales into the conv weights (one-time host transform).
    s1, b1 = _fold_bn(*bn1)
    s2, b2 = _fold_bn(*bn2)
    s3, b3 = _fold_bn(*bn3)
    w1f = w1[:, :, 0, 0] * s1[:, None]                                # (hidden, Cin)
    w2f = w2[:, :, 0, 0] * s3[:, None]                                # (Cout, hidden)
    dw_sc = dw[:, 0, :, :].reshape(hidden, kk) * s2[:, None]          # (hidden, k*k)
    dwf = jnp.tile(jnp.transpose(dw_sc), (1, nb))[:, :, None]         # (k*k, nb*hidden, 1)
    b1c = b1[:, None]                                                 # (hidden, 1)
    b2c = jnp.tile(b2, (nb,))[:, None]                                # (nb*hidden, 1)
    b3c = b3[:, None]                                                 # (Cout, 1)

    # Constant matrices: sel is 0/1 (exact in bf16); pool is 1/(bh*bw) (exact in bf16
    # iff the bin size is a power of two).
    bin_sz = (Hin // S) * (Win // S)
    pool_dtype = jnp.bfloat16 if (bin_sz & (bin_sz - 1)) == 0 else jnp.float32
    pool = jnp.asarray(_pool_matrix(Hin, Win, S), dtype=pool_dtype)   # (R, Q)
    sel_np, so_chk = _dw_selection(S, kernel_size, stride)
    assert so_chk == So
    sel_flat = jnp.asarray(sel_np.reshape(kk * Q, Qo), dtype=jnp.bfloat16)  # (k*k*Q, Qo)

    x_flat = x_nchw.reshape(N, Cin, R)          # free reshape of contiguous NCHW

    kernel = functools.partial(_skipblock_kernel, identity=identity)
    out_cmaj = pl.pallas_call(
        kernel,
        out_shape=jax.ShapeDtypeStruct((Cout, N * Qo), jnp.float32),
        grid=(N // nb,),
        in_specs=[
            pl.BlockSpec((nb, Cin, R), lambda b: (b, 0, 0)),
            pl.BlockSpec((R, Q), lambda b: (0, 0)),
            pl.BlockSpec((hidden, Cin), lambda b: (0, 0)),
            pl.BlockSpec((hidden, 1), lambda b: (0, 0)),
            pl.BlockSpec((kk * Q, Qo), lambda b: (0, 0)),
            pl.BlockSpec((kk, nb * hidden, 1), lambda b: (0, 0, 0)),
            pl.BlockSpec((nb * hidden, 1), lambda b: (0, 0)),
            pl.BlockSpec((Cout, hidden), lambda b: (0, 0)),
            pl.BlockSpec((Cout, 1), lambda b: (0, 0)),
        ],
        out_specs=pl.BlockSpec((Cout, nb * Qo), lambda b: (0, b)),
        compiler_params=pltpu.CompilerParams(
            dimension_semantics=("parallel",),
            vmem_limit_bytes=32 * 1024 * 1024),
    )(x_flat, pool, w1f, b1c, sel_flat, dwf, b2c, w2f, b3c)

    # channel-major slab (Cout, N*Ho*Wo) -> NCHW (single tiny transpose, fused in jit)
    return jnp.transpose(out_cmaj.reshape(Cout, N, So, So), (1, 0, 2, 3))


def skip_block_ref(x, w1, bn1, dw, bn2, w2, bn3, *, kernel_size, stride, size):
    """Pure-JAX reference (lax.conv), NCHW, for correctness check."""
    N, Cin, Hin, Win = x.shape
    S = size
    xp = x.reshape(N, Cin, S, Hin // S, S, Win // S).mean(axis=(3, 5))

    def bn(y, params):
        g, b, m, v = params
        s = g / jnp.sqrt(v + _BN_EPS)
        return y * s[None, :, None, None] + (b - m * s)[None, :, None, None]

    y = lax.conv_general_dilated(xp, w1, (1, 1), 'VALID')
    y = jax.nn.relu(bn(y, bn1))
    p = (kernel_size - 1) // 2
    z = lax.conv_general_dilated(y, dw, (stride, stride), [(p, p), (p, p)],
                                 feature_group_count=w1.shape[0])
    z = jax.nn.relu(bn(z, bn2))
    o = lax.conv_general_dilated(z, w2, (1, 1), 'VALID')
    o = bn(o, bn3)
    identity = (stride == 1) and (Cin == w2.shape[0])
    return xp + o if identity else o


if __name__ == "__main__":
    def run_case(key, N, inp, hidden, out_c, kernel_size, stride, size, Hin, Win):
        keys = jax.random.split(key, 10)
        x = jax.random.normal(keys[0], (N, inp, Hin, Win), jnp.float32)
        w1 = 0.2 * jax.random.normal(keys[1], (hidden, inp, 1, 1), jnp.float32)
        dw = 0.2 * jax.random.normal(keys[2], (hidden, 1, kernel_size, kernel_size),
                                     jnp.float32)
        w2 = 0.2 * jax.random.normal(keys[3], (out_c, hidden, 1, 1), jnp.float32)

        def make_bn(c, k0, k1):
            gamma = 1.0 + 0.1 * jax.random.normal(k0, (c,), jnp.float32)
            beta = 0.1 * jax.random.normal(k1, (c,), jnp.float32)
            mean = jnp.linspace(-0.2, 0.2, c, dtype=jnp.float32)
            var = jnp.linspace(0.5, 1.5, c, dtype=jnp.float32)
            return (gamma, beta, mean, var)

        bn1 = make_bn(hidden, keys[4], keys[5])
        bn2 = make_bn(hidden, keys[6], keys[7])
        bn3 = make_bn(out_c, keys[8], keys[9])

        y = skip_block(x, w1, bn1, dw, bn2, w2, bn3,
                       kernel_size=kernel_size, stride=stride, size=size)
        y = jax.block_until_ready(y)
        y_ref = skip_block_ref(x, w1, bn1, dw, bn2, w2, bn3,
                               kernel_size=kernel_size, stride=stride, size=size)
        assert y.shape == y_ref.shape
        assert jnp.allclose(y, y_ref, rtol=1e-4, atol=1e-4), \
            f"max abs err {jnp.max(jnp.abs(y - y_ref))}"

    root = jax.random.PRNGKey(0)
    k1, k2 = jax.random.split(root)
    # SkipBlock(inp=4, hidden_dim=32, out=4, kernel_size=3, stride=1, size=8): identity path
    run_case(k1, N=2, inp=4, hidden=32, out_c=4, kernel_size=3, stride=1, size=8,
             Hin=16, Win=16)
    # stride=2 / non-identity path (out != inp)
    run_case(k2, N=2, inp=4, hidden=32, out_c=8, kernel_size=3, stride=2, size=8,
             Hin=16, Win=16)
    print("KERNEL_OK")
</pallas_src>

<mosaic_0001>
module attributes {stable_mosaic.version = 11 : i64} {
  func.func @_skipblock_kernel(%arg0: i32, %arg1: memref<2x4x256xf32, #tpu.memory_space<vmem>>, %arg2: memref<256x64xbf16, #tpu.memory_space<vmem>>, %arg3: memref<32x4xf32, #tpu.memory_space<vmem>>, %arg4: memref<32x1xf32, #tpu.memory_space<vmem>>, %arg5: memref<576x64xbf16, #tpu.memory_space<vmem>>, %arg6: memref<9x64x1xf32, #tpu.memory_space<vmem>>, %arg7: memref<64x1xf32, #tpu.memory_space<vmem>>, %arg8: memref<4x32xf32, #tpu.memory_space<vmem>>, %arg9: memref<4x1xf32, #tpu.memory_space<vmem>>, %arg10: memref<4x128xf32, #tpu.memory_space<vmem>>) attributes {dimension_semantics = [#tpu.dimension_semantics<parallel>], iteration_bounds = array<i64: 1>, scalar_prefetch = 0 : i64, scratch_operands = 0 : i64, tpu.core_type = #tpu.core_type<tc>, window_params = [{transform_indices = @transform_0, window_bounds = array<i64: 2, 4, 256>}, {pipeline_mode = #tpu.pipeline_mode<synchronous>, transform_indices = @transform_1, window_bounds = array<i64: 256, 64>}, {pipeline_mode = #tpu.pipeline_mode<synchronous>, transform_indices = @transform_2, window_bounds = array<i64: 32, 4>}, {pipeline_mode = #tpu.pipeline_mode<synchronous>, transform_indices = @transform_3, window_bounds = array<i64: 32, 1>}, {pipeline_mode = #tpu.pipeline_mode<synchronous>, transform_indices = @transform_4, window_bounds = array<i64: 576, 64>}, {pipeline_mode = #tpu.pipeline_mode<synchronous>, transform_indices = @transform_5, window_bounds = array<i64: 9, 64, 1>}, {pipeline_mode = #tpu.pipeline_mode<synchronous>, transform_indices = @transform_6, window_bounds = array<i64: 64, 1>}, {pipeline_mode = #tpu.pipeline_mode<synchronous>, transform_indices = @transform_7, window_bounds = array<i64: 4, 32>}, {pipeline_mode = #tpu.pipeline_mode<synchronous>, transform_indices = @transform_8, window_bounds = array<i64: 4, 1>}, {transform_indices = @transform_9, window_bounds = array<i64: 4, 128>}]} {
    %c0 = arith.constant 0 : index
    %c0_0 = arith.constant 0 : index
    %0 = vector.load %arg2[%c0, %c0_0] : memref<256x64xbf16, #tpu.memory_space<vmem>>, vector<256x64xbf16>
    %1 = arith.extf %0 : vector<256x64xbf16> to vector<256x64xf32>
    %c0_1 = arith.constant 0 : index
    %c0_2 = arith.constant 0 : index
    %2 = vector.load %arg5[%c0_1, %c0_2] : memref<576x64xbf16, #tpu.memory_space<vmem>>, vector<576x64xbf16>
    %3 = arith.extf %2 : vector<576x64xbf16> to vector<576x64xf32>
    %c0_3 = arith.constant 0 : index
    %c0_4 = arith.constant 0 : index
    %4 = vector.load %arg3[%c0_3, %c0_4] : memref<32x4xf32, #tpu.memory_space<vmem>>, vector<32x4xf32>
    %c0_5 = arith.constant 0 : index
    %c0_6 = arith.constant 0 : index
    %5 = vector.load %arg4[%c0_5, %c0_6] : memref<32x1xf32, #tpu.memory_space<vmem>>, vector<32x1xf32>
    %c0_7 = arith.constant 0 : index
    %c0_8 = arith.constant 0 : index
    %c0_9 = arith.constant 0 : index
    %6 = vector.load %arg6[%c0_7, %c0_8, %c0_9] : memref<9x64x1xf32, #tpu.memory_space<vmem>>, vector<9x64x1xf32>
    %c0_10 = arith.constant 0 : index
    %c0_11 = arith.constant 0 : index
    %7 = vector.load %arg8[%c0_10, %c0_11] : memref<4x32xf32, #tpu.memory_space<vmem>>, vector<4x32xf32>
    %c0_12 = arith.constant 0 : index
    %c0_13 = arith.constant 0 : index
    %8 = vector.load %arg9[%c0_12, %c0_13] : memref<4x1xf32, #tpu.memory_space<vmem>>, vector<4x1xf32>
    %c0_14 = arith.constant 0 : index
    %c0_15 = arith.constant 0 : index
    %c0_16 = arith.constant 0 : index
    %9 = vector.load %arg1[%c0_14, %c0_15, %c0_16] : memref<2x4x256xf32, #tpu.memory_space<vmem>>, vector<1x4x256xf32>
    %10 = vector.shape_cast %9 : vector<1x4x256xf32> to vector<4x256xf32>
    %cst = arith.constant dense<0.000000e+00> : vector<4x64xf32>
    %11 = tpu.matmul %10, %1, %cst {dimension_numbers = #tpu.dot_dimension_numbers<[1], [0], [0], [1], [0, 0, 1, 1], [], []>} : vector<4x256xf32>, vector<256x64xf32>, vector<4x64xf32> -> vector<4x64xf32>
    %cst_17 = arith.constant dense<0.000000e+00> : vector<32x64xf32>
    %12 = tpu.matmul %4, %11, %cst_17 {dimension_numbers = #tpu.dot_dimension_numbers<[1], [0], [0], [1], [0, 0, 1, 1], [], []>} : vector<32x4xf32>, vector<4x64xf32>, vector<32x64xf32> -> vector<32x64xf32>
    %13 = vector.broadcast %5 : vector<32x1xf32> to vector<32x64xf32>
    %14 = arith.addf %12, %13 : vector<32x64xf32>
    %cst_18 = arith.constant 0.000000e+00 : f32
    %15 = vector.broadcast %cst_18 : f32 to vector<32x64xf32>
    %16 = arith.maximumf %14, %15 : vector<32x64xf32>
    %c1 = arith.constant 1 : index
    %c0_19 = arith.constant 0 : index
    %c0_20 = arith.constant 0 : index
    %17 = vector.load %arg1[%c1, %c0_19, %c0_20] : memref<2x4x256xf32, #tpu.memory_space<vmem>>, vector<1x4x256xf32>
    %18 = vector.shape_cast %17 : vector<1x4x256xf32> to vector<4x256xf32>
    %cst_21 = arith.constant dense<0.000000e+00> : vector<4x64xf32>
    %19 = tpu.matmul %18, %1, %cst_21 {dimension_numbers = #tpu.dot_dimension_numbers<[1], [0], [0], [1], [0, 0, 1, 1], [], []>} : vector<4x256xf32>, vector<256x64xf32>, vector<4x64xf32> -> vector<4x64xf32>
    %cst_22 = arith.constant dense<0.000000e+00> : vector<32x64xf32>
    %20 = tpu.matmul %4, %19, %cst_22 {dimension_numbers = #tpu.dot_dimension_numbers<[1], [0], [0], [1], [0, 0, 1, 1], [], []>} : vector<32x4xf32>, vector<4x64xf32>, vector<32x64xf32> -> vector<32x64xf32>
    %21 = vector.broadcast %5 : vector<32x1xf32> to vector<32x64xf32>
    %22 = arith.addf %20, %21 : vector<32x64xf32>
    %cst_23 = arith.constant 0.000000e+00 : f32
    %23 = vector.broadcast %cst_23 : f32 to vector<32x64xf32>
    %24 = arith.maximumf %22, %23 : vector<32x64xf32>
    %25 = tpu.concatenate %16, %24 in 0 : vector<32x64xf32>, vector<32x64xf32> -> vector<64x64xf32>
    %26 = vector.extract_strided_slice %6 {offsets = [0, 0, 0], sizes = [1, 64, 1], strides = [1, 1, 1]} : vector<9x64x1xf32> to vector<1x64x1xf32>
    %27 = vector.shape_cast %26 : vector<1x64x1xf32> to vector<64x1xf32>
    %28 = vector.broadcast %27 : vector<64x1xf32> to vector<64x64xf32>
    %29 = arith.mulf %25, %28 : vector<64x64xf32>
    %30 = vector.extract_strided_slice %6 {offsets = [1, 0, 0], sizes = [1, 64, 1], strides = [1, 1, 1]} : vector<9x64x1xf32> to vector<1x64x1xf32>
    %31 = vector.shape_cast %30 : vector<1x64x1xf32> to vector<64x1xf32>
    %32 = vector.broadcast %31 : vector<64x1xf32> to vector<64x64xf32>
    %33 = arith.mulf %25, %32 : vector<64x64xf32>
    %34 = vector.extract_strided_slice %6 {offsets = [2, 0, 0], sizes = [1, 64, 1], strides = [1, 1, 1]} : vector<9x64x1xf32> to vector<1x64x1xf32>
    %35 = vector.shape_cast %34 : vector<1x64x1xf32> to vector<64x1xf32>
    %36 = vector.broadcast %35 : vector<64x1xf32> to vector<64x64xf32>
    %37 = arith.mulf %25, %36 : vector<64x64xf32>
    %38 = vector.extract_strided_slice %6 {offsets = [3, 0, 0], sizes = [1, 64, 1], strides = [1, 1, 1]} : vector<9x64x1xf32> to vector<1x64x1xf32>
    %39 = vector.shape_cast %38 : vector<1x64x1xf32> to vector<64x1xf32>
    %40 = vector.broadcast %39 : vector<64x1xf32> to vector<64x64xf32>
    %41 = arith.mulf %25, %40 : vector<64x64xf32>
    %42 = vector.extract_strided_slice %6 {offsets = [4, 0, 0], sizes = [1, 64, 1], strides = [1, 1, 1]} : vector<9x64x1xf32> to vector<1x64x1xf32>
    %43 = vector.shape_cast %42 : vector<1x64x1xf32> to vector<64x1xf32>
    %44 = vector.broadcast %43 : vector<64x1xf32> to vector<64x64xf32>
    %45 = arith.mulf %25, %44 : vector<64x64xf32>
    %46 = vector.extract_strided_slice %6 {offsets = [5, 0, 0], sizes = [1, 64, 1], strides = [1, 1, 1]} : vector<9x64x1xf32> to vector<1x64x1xf32>
    %47 = vector.shape_cast %46 : vector<1x64x1xf32> to vector<64x1xf32>
    %48 = vector.broadcast %47 : vector<64x1xf32> to vector<64x64xf32>
    %49 = arith.mulf %25, %48 : vector<64x64xf32>
    %50 = vector.extract_strided_slice %6 {offsets = [6, 0, 0], sizes = [1, 64, 1], strides = [1, 1, 1]} : vector<9x64x1xf32> to vector<1x64x1xf32>
    %51 = vector.shape_cast %50 : vector<1x64x1xf32> to vector<64x1xf32>
    %52 = vector.broadcast %51 : vector<64x1xf32> to vector<64x64xf32>
    %53 = arith.mulf %25, %52 : vector<64x64xf32>
    %54 = vector.extract_strided_slice %6 {offsets = [7, 0, 0], sizes = [1, 64, 1], strides = [1, 1, 1]} : vector<9x64x1xf32> to vector<1x64x1xf32>
    %55 = vector.shape_cast %54 : vector<1x64x1xf32> to vector<64x1xf32>
    %56 = vector.broadcast %55 : vector<64x1xf32> to vector<64x64xf32>
    %57 = arith.mulf %25, %56 : vector<64x64xf32>
    %58 = vector.extract_strided_slice %6 {offsets = [8, 0, 0], sizes = [1, 64, 1], strides = [1, 1, 1]} : vector<9x64x1xf32> to vector<1x64x1xf32>
    %59 = vector.shape_cast %58 : vector<1x64x1xf32> to vector<64x1xf32>
    %60 = vector.broadcast %59 : vector<64x1xf32> to vector<64x64xf32>
    %61 = arith.mulf %25, %60 : vector<64x64xf32>
    %62 = tpu.concatenate %29, %33, %37, %41, %45, %49, %53, %57, %61 in 1 : vector<64x64xf32>, vector<64x64xf32>, vector<64x64xf32>, vector<64x64xf32>, vector<64x64xf32>, vector<64x64xf32>, vector<64x64xf32>, vector<64x64xf32>, vector<64x64xf32> -> vector<64x576xf32>
    %cst_24 = arith.constant dense<0.000000e+00> : vector<64x64xf32>
    %63 = tpu.matmul %62, %3, %cst_24 {dimension_numbers = #tpu.dot_dimension_numbers<[1], [0], [0], [1], [0, 0, 1, 1], [], []>} : vector<64x576xf32>, vector<576x64xf32>, vector<64x64xf32> -> vector<64x64xf32>
    %c0_25 = arith.constant 0 : index
    %c0_26 = arith.constant 0 : index
    %64 = vector.load %arg7[%c0_25, %c0_26] : memref<64x1xf32, #tpu.memory_space<vmem>>, vector<64x1xf32>
    %65 = vector.broadcast %64 : vector<64x1xf32> to vector<64x64xf32>
    %66 = arith.addf %63, %65 : vector<64x64xf32>
    %cst_27 = arith.constant 0.000000e+00 : f32
    %67 = vector.broadcast %cst_27 : f32 to vector<64x64xf32>
    %68 = arith.maximumf %66, %67 : vector<64x64xf32>
    %69 = vector.extract_strided_slice %68 {offsets = [0, 0], sizes = [32, 64], strides = [1, 1]} : vector<64x64xf32> to vector<32x64xf32>
    %cst_28 = arith.constant dense<0.000000e+00> : vector<4x64xf32>
    %70 = tpu.matmul %7, %69, %cst_28 {dimension_numbers = #tpu.dot_dimension_numbers<[1], [0], [0], [1], [0, 0, 1, 1], [], []>} : vector<4x32xf32>, vector<32x64xf32>, vector<4x64xf32> -> vector<4x64xf32>
    %71 = vector.broadcast %8 : vector<4x1xf32> to vector<4x64xf32>
    %72 = arith.addf %70, %71 : vector<4x64xf32>
    %73 = arith.addf %72, %11 : vector<4x64xf32>
    %74 = vector.extract_strided_slice %68 {offsets = [32, 0], sizes = [32, 64], strides = [1, 1]} : vector<64x64xf32> to vector<32x64xf32>
    %cst_29 = arith.constant dense<0.000000e+00> : vector<4x64xf32>
    %75 = tpu.matmul %7, %74, %cst_29 {dimension_numbers = #tpu.dot_dimension_numbers<[1], [0], [0], [1], [0, 0, 1, 1], [], []>} : vector<4x32xf32>, vector<32x64xf32>, vector<4x64xf32> -> vector<4x64xf32>
    %76 = vector.broadcast %8 : vector<4x1xf32> to vector<4x64xf32>
    %77 = arith.addf %75, %76 : vector<4x64xf32>
    %78 = arith.addf %77, %19 : vector<4x64xf32>
    %79 = tpu.concatenate %73, %78 in 1 : vector<4x64xf32>, vector<4x64xf32> -> vector<4x128xf32>
    %c0_30 = arith.constant 0 : index
    %c0_31 = arith.constant 0 : index
    %80 = vector.load %arg10[%c0_30, %c0_31] : memref<4x128xf32, #tpu.memory_space<vmem>>, vector<4x128xf32>
    tpu.vector_store %arg10[%c0_30, %c0_31], %79 {strides = array<i32>} : memref<4x128xf32, #tpu.memory_space<vmem>>, vector<4x128xf32>,
    return
  }
  func.func @transform_0(%arg0: i32) -> (i32, i32, i32) {
    %c0_i32 = arith.constant 0 : i32
    %c0_i32_0 = arith.constant 0 : i32
    %c0_i32_1 = arith.constant 0 : i32
    return %arg0, %c0_i32, %c0_i32_0 : i32, i32, i32
  }
  func.func @transform_1(%arg0: i32) -> (i32, i32) {
    %c0_i32 = arith.constant 0 : i32
    %c0_i32_0 = arith.constant 0 : i32
    %c0_i32_1 = arith.constant 0 : i32
    return %c0_i32, %c0_i32_0 : i32, i32
  }
  func.func @transform_2(%arg0: i32) -> (i32, i32) {
    %c0_i32 = arith.constant 0 : i32
    %c0_i32_0 = arith.constant 0 : i32
    %c0_i32_1 = arith.constant 0 : i32
    return %c0_i32, %c0_i32_0 : i32, i32
  }
  func.func @transform_3(%arg0: i32) -> (i32, i32) {
    %c0_i32 = arith.constant 0 : i32
    %c0_i32_0 = arith.constant 0 : i32
    %c0_i32_1 = arith.constant 0 : i32
    return %c0_i32, %c0_i32_0 : i32, i32
  }
  func.func @transform_4(%arg0: i32) -> (i32, i32) {
    %c0_i32 = arith.constant 0 : i32
    %c0_i32_0 = arith.constant 0 : i32
    %c0_i32_1 = arith.constant 0 : i32
    return %c0_i32, %c0_i32_0 : i32, i32
  }
  func.func @transform_5(%arg0: i32) -> (i32, i32, i32) {
    %c0_i32 = arith.constant 0 : i32
    %c0_i32_0 = arith.constant 0 : i32
    %c0_i32_1 = arith.constant 0 : i32
    %c0_i32_2 = arith.constant 0 : i32
    return %c0_i32, %c0_i32_0, %c0_i32_1 : i32, i32, i32
  }
  func.func @transform_6(%arg0: i32) -> (i32, i32) {
    %c0_i32 = arith.constant 0 : i32
    %c0_i32_0 = arith.constant 0 : i32
    %c0_i32_1 = arith.constant 0 : i32
    return %c0_i32, %c0_i32_0 : i32, i32
  }
  func.func @transform_7(%arg0: i32) -> (i32, i32) {
    %c0_i32 = arith.constant 0 : i32
    %c0_i32_0 = arith.constant 0 : i32
    %c0_i32_1 = arith.constant 0 : i32
    return %c0_i32, %c0_i32_0 : i32, i32
  }
  func.func @transform_8(%arg0: i32) -> (i32, i32) {
    %c0_i32 = arith.constant 0 : i32
    %c0_i32_0 = arith.constant 0 : i32
    %c0_i32_1 = arith.constant 0 : i32
    return %c0_i32, %c0_i32_0 : i32, i32
  }
  func.func @transform_9(%arg0: i32) -> (i32, i32) {
    %c0_i32 = arith.constant 0 : i32
    %c0_i32_0 = arith.constant 0 : i32
    return %c0_i32, %arg0 : i32, i32
  }
}

</mosaic_0001>

<bundles_post_ra>
// kernel: squeeze.5
= control target key start
LH: loop header
LB: loop body
LE: loop exit
PB: predicated region body
PF: predicated region fallthrough
CT: control target
= control target key end

     0   :  { %vm16_vm0 = vcmask 261120   ;;  %s61_s0 = inlined_call_operand.vmem [shape: f32[32,3,3], index: 0, kind: input, shape index: {}]   ;;  %s62_s1 = inlined_call_operand.vmem [shape: f32[32,9], index: 1, kind: output, shape index: {}]  }
   0x1   :  { %v29_v0 = vld [vmem:[%s61_s0 + $0x8] sm:$0xf]  ;;  %v30_v1 = vld [vmem:[%s61_s0 + $0x4] sm:$0xf]  ;;  %v13_v2 = vld [vmem:[%s61_s0] sm:$0xf] }
   0x2   :  { %8 = vst [vmem:[#allocation0 + $0x10] sm:$0xf] %v29_v0  ;;  %12 = vst [vmem:[#allocation0 + $0x8] sm:$0xf] %v30_v1 }
   0x3   :  { %14 = vst [vmem:[#allocation0] sm:$0xf] %v13_v2 }
   0x9   :  { %v19_v4 = vld [vmem:[#allocation0 + $0x8] sm:$0x7]   ;;  %v24_v5 = vld [vmem:[#allocation0 + $0x10] sm:$0x7]  }
   0xa   :  { %v15_v3 = vld [vmem:[#allocation0] sm:$0x7]   ;;  %31 = vst.msk [vmem:[%s62_s1 + $0x3] sm:$0x7] %vm16_vm0, %v19_v4   ;;  %32 = vst.msk [vmem:[%s62_s1 + $0x6] sm:$0x7] %vm16_vm0, %v24_v5  }
   0xb   :  { %17 = vst.msk [vmem:[%s62_s1] sm:$0x7] %vm16_vm0, %v15_v3  }

// kernel: tile.18
= control target key start
LH: loop header
LB: loop body
LE: loop exit
PB: predicated region body
PF: predicated region fallthrough
CT: control target
= control target key end

     0   :  { %s22_s0 = inlined_call_operand.vmem [shape: f32[32], index: 0, kind: input, shape index: {}]   ;;  %s23_s1 = inlined_call_operand.vmem [shape: f32[2,32], index: 1, kind: output, shape index: {}]  }
   0x1   :  { %v4_v0 = vld [vmem:[%s22_s0] ss:$0 sm:$0xff] }
   0x2   :  { %5 = vst [vmem:[%s23_s1] sm:$0x3] %v4_v0 }

// kernel: tile.0
= control target key start
LH: loop header
LB: loop body
LE: loop exit
PB: predicated region body
PF: predicated region fallthrough
CT: control target
= control target key end

     0   :  { %s354_s8 = smov 125   ;;  %s355_s9 = smov 126   ;;  %vm7_vm0 = vcmask 7168   ;;  %s653_s0 = inlined_call_operand.vmem [shape: f32[2,32], index: 0, kind: input, shape index: {}]   ;;  %s654_s1 = inlined_call_operand.vmem [shape: f32[64,1], index: 1, kind: output, shape index: {}]  }
   0x1   :  { %v4_v0 = vld [vmem:[%s653_s0] sm:$0x3]  ;;  %s353_s0 = smov 127   ;;  %s356_s10 = smov 124  }
   0x2   :  { %5 = vst [vmem:[#allocation0] sm:$0x3] %v4_v0  ;;  %s357_s11 = smov 123   ;;  %s358_s12 = smov 122  }
   0x3   :  { %s359_s13 = smov 121   ;;  %s360_s14 = smov 120  }
   0x4   :  { %s361_s15 = smov 119   ;;  %s362_s16 = smov 118  }
   0x5   :  { %s363_s17 = smov 117   ;;  %s364_s18 = smov 116  }
   0x6   :  { %s365_s19 = smov 115   ;;  %s366_s20 = smov 114  }
   0x7   :  { %s367_s21 = smov 113   ;;  %s368_s22 = smov 112  }
   0x8   :  { %s369_s23 = smov 111   ;;  %s370_s24 = smov 110  }
   0x9   :  { %v11_v1 = vld [vmem:[#allocation0] sm:$0x3]   ;;  %s371_s25 = smov 109   ;;  %s372_s26 = smov 108  }
   0xa   :  { %v27_v2 = vld [vmem:[#allocation0] sm:$0x3]   ;;  %12 = vrot.lane.b32.xlu0 %v11_v1, %s353_s0  ;;  %s373_s27 = smov 107   ;;  %s374_s28 = smov 106  }
   0xb   :  { %28 = vrot.lane.b32.xlu1 %v27_v2, %s354_s8  ;;  %v19_v3 = vld [vmem:[#allocation0] sm:$0x3]   ;;  %s375_s29 = smov 105   ;;  %s376_s30 = smov 104  }
   0xc   :  { %v35_v4 = vld [vmem:[#allocation0] sm:$0x3]   ;;  %s377_s6 = smov 103   ;;  %s378_s7 = smov 102  }
   0xd   :  { %v43_v5 = vld [vmem:[#allocation0] sm:$0x3]   ;;  %s379_s0 = smov 101   ;;  %s380_s8 = smov 100  }
   0xe   :  { %20 = vrot.lane.b32.xlu0 %v19_v3, %s355_s9  ;;  %v51_v6 = vld [vmem:[#allocation0] sm:$0x3]   ;;  %s381_s9 = smov 99  }
   0xf   :  { %36 = vrot.lane.b32.xlu1 %v35_v4, %s356_s10  ;;  %v59_v7 = vld [vmem:[#allocation0] sm:$0x3]   ;;  %s382_s10 = smov 98  }
  0x10   :  { %v67_v8 = vld [vmem:[#allocation0] sm:$0x3]  }
  0x11   :  { %v75_v9 = vld [vmem:[#allocation0] sm:$0x3]  }
  0x12   :  { %44 = vrot.lane.b32.xlu0 %v43_v5, %s357_s11  ;;  %v83_v10 = vld [vmem:[#allocation0] sm:$0x3]   ;;  %s383_s11 = smov 97  }
  0x13   :  { %52 = vrot.lane.b32.xlu1 %v51_v6, %s358_s12  ;;  %v91_v11 = vld [vmem:[#allocation0] sm:$0x3]  }
  0x14   :  { %v99_v12 = vld [vmem:[#allocation0] sm:$0x3]  }
  0x15   :  { %v107_v13 = vld [vmem:[#allocation0] sm:$0x3]  }
  0x16   :  { %60 = vrot.lane.b32.xlu0 %v59_v7, %s359_s13  ;;  %v115_v14 = vld [vmem:[#allocation0] sm:$0x3]  }
  0x17   :  { %68 = vrot.lane.b32.xlu1 %v67_v8, %s360_s14  ;;  %v123_v15 = vld [vmem:[#allocation0] sm:$0x3]  }
  0x18   :  { %v131_v16 = vld [vmem:[#allocation0] sm:$0x3]  }
  0x19   :  { %v139_v17 = vld [vmem:[#allocation0] sm:$0x3]  }
  0x1a   :  { %76 = vrot.lane.b32.xlu0 %v75_v9, %s361_s15  ;;  %v147_v18 = vld [vmem:[#allocation0] sm:$0x3]  }
  0x1b   :  { %84 = vrot.lane.b32.xlu1 %v83_v10, %s362_s16  ;;  %v155_v19 = vld [vmem:[#allocation0] sm:$0x3]  }
  0x1c   :  { %v163_v20 = vld [vmem:[#allocation0] sm:$0x3]  }
  0x1d   :  { %v171_v21 = vld [vmem:[#allocation0] sm:$0x3]  }
  0x1e   :  { %92 = vrot.lane.b32.xlu0 %v91_v11, %s363_s17  ;;  %v179_v22 = vld [vmem:[#allocation0] sm:$0x3]  }
  0x1f   :  { %100 = vrot.lane.b32.xlu1 %v99_v12, %s364_s18  ;;  %v187_v23 = vld [vmem:[#allocation0] sm:$0x3]  }
  0x20   :  { %v195_v24 = vld [vmem:[#allocation0] sm:$0x3]  }
  0x21   :  { %v203_v25 = vld [vmem:[#allocation0] sm:$0x3]  }
  0x22   :  { %108 = vrot.lane.b32.xlu0 %v107_v13, %s365_s19  ;;  %v211_v26 = vld [vmem:[#allocation0] sm:$0x3]  }
  0x23   :  { %116 = vrot.lane.b32.xlu1 %v115_v14, %s366_s20  ;;  %v6_v27 = vld [vmem:[#allocation0] sm:$0x3]  }
  0x24   :  { %8 = vst.msk [vmem:[%s654_s1] sm:$0x1] %vm7_vm0, %v6_v27   ;;  %259 = vst.msk [vmem:[%s654_s1 + $0x1f] sm:$0x2] %vm7_vm0, %v6_v27   ;;  %v219_v28 = vld [vmem:[#allocation0] sm:$0x3]  }
  0x25   :  { %v227_v29 = vld [vmem:[#allocation0] sm:$0x3]  }
  0x26   :  { %124 = vrot.lane.b32.xlu0 %v123_v15, %s367_s21  ;;  %v235_v30 = vld [vmem:[#allocation0] sm:$0x3]  }
  0x27   :  { %132 = vrot.lane.b32.xlu1 %v131_v16, %s368_s22  ;;  %v243_v31 = vld [vmem:[#allocation0] sm:$0x3]  }
  0x28   :  { %v251_v32 = vld [vmem:[#allocation0] sm:$0x3]  }
  0x2a   :  { %140 = vrot.lane.b32.xlu0 %v139_v17, %s369_s23 }
  0x2b   :  { %148 = vrot.lane.b32.xlu1 %v147_v18, %s370_s24 }
  0x2e   :  { %156 = vrot.lane.b32.xlu0 %v155_v19, %s371_s25 }
  0x2f   :  { %164 = vrot.lane.b32.xlu1 %v163_v20, %s372_s26 }
  0x32   :  { %172 = vrot.lane.b32.xlu0 %v171_v21, %s373_s27 }
  0x33   :  { %180 = vrot.lane.b32.xlu1 %v179_v22, %s374_s28 }
  0x36   :  { %188 = vrot.lane.b32.xlu0 %v187_v23, %s375_s29 }
  0x37   :  { %196 = vrot.lane.b32.xlu1 %v195_v24, %s376_s30 }
  0x3a   :  { %204 = vrot.lane.b32.xlu0 %v203_v25, %s377_s6 }
  0x3b   :  { %212 = vrot.lane.b32.xlu1 %v211_v26, %s378_s7 }
  0x3e   :  { %220 = vrot.lane.b32.xlu0 %v219_v28, %s379_s0 }
  0x3f   :  { %228 = vrot.lane.b32.xlu1 %v227_v29, %s380_s8 }
  0x42   :  { %236 = vrot.lane.b32.xlu0 %v235_v30, %s381_s9 }
  0x43   :  { %244 = vrot.lane.b32.xlu1 %v243_v31, %s382_s10 }
  0x46   :  { %252 = vrot.lane.b32.xlu0 %v251_v32, %s383_s11 }
  0x7c   :  { %v13_v33 = vpop.permute.xlu0 %12  }
  0x7d   :  { %v29_v34 = vpop.permute.xlu1 %28   ;;  %260 = vst.msk [vmem:[%s654_s1 + $0x1] sm:$0x1] %vm7_vm0, %v13_v33   ;;  %261 = vst.msk [vmem:[%s654_s1 + $0x20] sm:$0x2] %vm7_vm0, %v13_v33  }
  0x7e   :  { %264 = vst.msk [vmem:[%s654_s1 + $0x3] sm:$0x1] %vm7_vm0, %v29_v34   ;;  %265 = vst.msk [vmem:[%s654_s1 + $0x22] sm:$0x2] %vm7_vm0, %v29_v34  }
  0x80   :  { %v21_v35 = vpop.permute.xlu0 %20  }
  0x81   :  { %v37_v36 = vpop.permute.xlu1 %36   ;;  %262 = vst.msk [vmem:[%s654_s1 + $0x2] sm:$0x1] %vm7_vm0, %v21_v35   ;;  %263 = vst.msk [vmem:[%s654_s1 + $0x21] sm:$0x2] %vm7_vm0, %v21_v35  }
  0x82   :  { %266 = vst.msk [vmem:[%s654_s1 + $0x4] sm:$0x1] %vm7_vm0, %v37_v36   ;;  %267 = vst.msk [vmem:[%s654_s1 + $0x23] sm:$0x2] %vm7_vm0, %v37_v36  }
  0x84   :  { %v45_v37 = vpop.permute.xlu0 %44  }
  0x85   :  { %v53_v38 = vpop.permute.xlu1 %52   ;;  %268 = vst.msk [vmem:[%s654_s1 + $0x5] sm:$0x1] %vm7_vm0, %v45_v37   ;;  %269 = vst.msk [vmem:[%s654_s1 + $0x24] sm:$0x2] %vm7_vm0, %v45_v37  }
  0x86   :  { %270 = vst.msk [vmem:[%s654_s1 + $0x6] sm:$0x1] %vm7_vm0, %v53_v38   ;;  %271 = vst.msk [vmem:[%s654_s1 + $0x25] sm:$0x2] %vm7_vm0, %v53_v38  }
  0x88   :  { %v61_v39 = vpop.permute.xlu0 %60  }
  0x89   :  { %v69_v40 = vpop.permute.xlu1 %68   ;;  %272 = vst.msk [vmem:[%s654_s1 + $0x7] sm:$0x1] %vm7_vm0, %v61_v39   ;;  %273 = vst.msk [vmem:[%s654_s1 + $0x26] sm:$0x2] %vm7_vm0, %v61_v39  }
  0x8a   :  { %274 = vst.msk [vmem:[%s654_s1 + $0x8] sm:$0x1] %vm7_vm0, %v69_v40   ;;  %275 = vst.msk [vmem:[%s654_s1 + $0x27] sm:$0x2] %vm7_vm0, %v69_v40  }
  0x8c   :  { %v77_v41 = vpop.permute.xlu0 %76  }
  0x8d   :  { %v85_v42 = vpop.permute.xlu1 %84   ;;  %276 = vst.msk [vmem:[%s654_s1 + $0x9] sm:$0x1] %vm7_vm0, %v77_v41   ;;  %277 = vst.msk [vmem:[%s654_s1 + $0x28] sm:$0x2] %vm7_vm0, %v77_v41  }
  0x8e   :  { %278 = vst.msk [vmem:[%s654_s1 + $0xa] sm:$0x1] %vm7_vm0, %v85_v42   ;;  %279 = vst.msk [vmem:[%s654_s1 + $0x29] sm:$0x2] %vm7_vm0, %v85_v42  }
  0x90   :  { %v93_v43 = vpop.permute.xlu0 %92  }
  0x91   :  { %v101_v44 = vpop.permute.xlu1 %100   ;;  %280 = vst.msk [vmem:[%s654_s1 + $0xb] sm:$0x1] %vm7_vm0, %v93_v43   ;;  %281 = vst.msk [vmem:[%s654_s1 + $0x2a] sm:$0x2] %vm7_vm0, %v93_v43  }
  0x92   :  { %282 = vst.msk [vmem:[%s654_s1 + $0xc] sm:$0x1] %vm7_vm0, %v101_v44   ;;  %283 = vst.msk [vmem:[%s654_s1 + $0x2b] sm:$0x2] %vm7_vm0, %v101_v44  }
  0x94   :  { %v109_v45 = vpop.permute.xlu0 %108  }
  0x95   :  { %v117_v46 = vpop.permute.xlu1 %116   ;;  %284 = vst.msk [vmem:[%s654_s1 + $0xd] sm:$0x1] %vm7_vm0, %v109_v45   ;;  %285 = vst.msk [vmem:[%s654_s1 + $0x2c] sm:$0x2] %vm7_vm0, %v109_v45  }
  0x96   :  { %286 = vst.msk [vmem:[%s654_s1 + $0xe] sm:$0x1] %vm7_vm0, %v117_v46   ;;  %287 = vst.msk [vmem:[%s654_s1 + $0x2d] sm:$0x2] %vm7_vm0, %v117_v46  }
  0x98   :  { %v125_v47 = vpop.permute.xlu0 %124  }
  0x99   :  { %v133_v48 = vpop.permute.xlu1 %132   ;;  %288 = vst.msk [vmem:[%s654_s1 + $0xf] sm:$0x1] %vm7_vm0, %v125_v47   ;;  %289 = vst.msk [vmem:[%s654_s1 + $0x2e] sm:$0x2] %vm7_vm0, %v125_v47  }
  0x9a   :  { %290 = vst.msk [vmem:[%s654_s1 + $0x10] sm:$0x1] %vm7_vm0, %v133_v48   ;;  %291 = vst.msk [vmem:[%s654_s1 + $0x2f] sm:$0x2] %vm7_vm0, %v133_v48  }
  0x9c   :  { %v141_v49 = vpop.permute.xlu0 %140  }
  0x9d   :  { %v149_v50 = vpop.permute.xlu1 %148   ;;  %292 = vst.msk [vmem:[%s654_s1 + $0x11] sm:$0x1] %vm7_vm0, %v141_v49   ;;  %293 = vst.msk [vmem:[%s654_s1 + $0x30] sm:$0x2] %vm7_vm0, %v141_v49  }
  0x9e   :  { %294 = vst.msk [vmem:[%s654_s1 + $0x12] sm:$0x1] %vm7_vm0, %v149_v50   ;;  %295 = vst.msk [vmem:[%s654_s1 + $0x31] sm:$0x2] %vm7_vm0, %v149_v50  }
  0xa0   :  { %v157_v51 = vpop.permute.xlu0 %156  }
  0xa1   :  { %v165_v52 = vpop.permute.xlu1 %164   ;;  %296 = vst.msk [vmem:[%s654_s1 + $0x13] sm:$0x1] %vm7_vm0, %v157_v51   ;;  %297 = vst.msk [vmem:[%s654_s1 + $0x32] sm:$0x2] %vm7_vm0, %v157_v51  }
  0xa2   :  { %298 = vst.msk [vmem:[%s654_s1 + $0x14] sm:$0x1] %vm7_vm0, %v165_v52   ;;  %299 = vst.msk [vmem:[%s654_s1 + $0x33] sm:$0x2] %vm7_vm0, %v165_v52  }
  0xa4   :  { %v173_v53 = vpop.permute.xlu0 %172  }
  0xa5   :  { %v181_v54 = vpop.permute.xlu1 %180   ;;  %300 = vst.msk [vmem:[%s654_s1 + $0x15] sm:$0x1] %vm7_vm0, %v173_v53   ;;  %301 = vst.msk [vmem:[%s654_s1 + $0x34] sm:$0x2] %vm7_vm0, %v173_v53  }
  0xa6   :  { %302 = vst.msk [vmem:[%s654_s1 + $0x16] sm:$0x1] %vm7_vm0, %v181_v54   ;;  %303 = vst.msk [vmem:[%s654_s1 + $0x35] sm:$0x2] %vm7_vm0, %v181_v54  }
  0xa8   :  { %v189_v55 = vpop.permute.xlu0 %188  }
  0xa9   :  { %v197_v56 = vpop.permute.xlu1 %196   ;;  %304 = vst.msk [vmem:[%s654_s1 + $0x17] sm:$0x1] %vm7_vm0, %v189_v55   ;;  %305 = vst.msk [vmem:[%s654_s1 + $0x36] sm:$0x2] %vm7_vm0, %v189_v55  }
  0xaa   :  { %306 = vst.msk [vmem:[%s654_s1 + $0x18] sm:$0x1] %vm7_vm0, %v197_v56   ;;  %307 = vst.msk [vmem:[%s654_s1 + $0x37] sm:$0x2] %vm7_vm0, %v197_v56  }
  0xac   :  { %v205_v57 = vpop.permute.xlu0 %204  }
  0xad   :  { %v213_v58 = vpop.permute.xlu1 %212   ;;  %308 = vst.msk [vmem:[%s654_s1 + $0x19] sm:$0x1] %vm7_vm0, %v205_v57   ;;  %309 = vst.msk [vmem:[%s654_s1 + $0x38] sm:$0x2] %vm7_vm0, %v205_v57  }
  0xae   :  { %310 = vst.msk [vmem:[%s654_s1 + $0x1a] sm:$0x1] %vm7_vm0, %v213_v58   ;;  %311 = vst.msk [vmem:[%s654_s1 + $0x39] sm:$0x2] %vm7_vm0, %v213_v58  }
  0xb0   :  { %v221_v59 = vpop.permute.xlu0 %220  }
  0xb1   :  { %v229_v60 = vpop.permute.xlu1 %228   ;;  %312 = vst.msk [vmem:[%s654_s1 + $0x1b] sm:$0x1] %vm7_vm0, %v221_v59   ;;  %313 = vst.msk [vmem:[%s654_s1 + $0x3a] sm:$0x2] %vm7_vm0, %v221_v59  }
  0xb2   :  { %314 = vst.msk [vmem:[%s654_s1 + $0x1c] sm:$0x1] %vm7_vm0, %v229_v60   ;;  %315 = vst.msk [vmem:[%s654_s1 + $0x3b] sm:$0x2] %vm7_vm0, %v229_v60  }
  0xb4   :  { %v237_v61 = vpop.permute.xlu0 %236  }
  0xb5   :  { %v245_v62 = vpop.permute.xlu1 %244   ;;  %316 = vst.msk [vmem:[%s654_s1 + $0x1d] sm:$0x1] %vm7_vm0, %v237_v61   ;;  %317 = vst.msk [vmem:[%s654_s1 + $0x3c] sm:$0x2] %vm7_vm0, %v237_v61  }
  0xb6   :  { %318 = vst.msk [vmem:[%s654_s1 + $0x1e] sm:$0x1] %vm7_vm0, %v245_v62   ;;  %319 = vst.msk [vmem:[%s654_s1 + $0x3d] sm:$0x2] %vm7_vm0, %v245_v62  }
  0xb8   :  { %v253_v63 = vpop.permute.xlu0 %252  }
  0xb9   :  { %320 = vst.msk [vmem:[%s654_s1 + $0x1f] sm:$0x1] %vm7_vm0, %v253_v63   ;;  %321 = vst.msk [vmem:[%s654_s1 + $0x3e] sm:$0x2] %vm7_vm0, %v253_v63  }

// kernel: skip_block.1
= control target key start
LH: loop header
LB: loop body
LE: loop exit
PB: predicated region body
PF: predicated region fallthrough
CT: control target
= control target key end

     0   :  { %v2646_v3 = vmov 0   ;;  %vm416_vm0 = vcmask 31744   ;;  %vm429_vm1 = vcmask 1043456   ;;  %s2647_s17 = smov 64   ;;  %vm1249_vm2 = vcmask 523264   ;;  %s3596_s1 = inlined_call_operand.vmem [shape: bf16[256,64], index: 1, kind: input, shape index: {}]   ;;  %s3597_s0 = inlined_call_operand.vmem [shape: f32[2,4,256], index: 0, kind: input, shape index: {}]   ;;  %s3598_s5 = inlined_call_operand.vmem [shape: f32[9,64,1], index: 5, kind: input, shape index: {}]   ;;  %s3599_s3 = inlined_call_operand.vmem [shape: f32[32,1], index: 3, kind: input, shape index: {}]   ;;  %s3600_s2 = inlined_call_operand.vmem [shape: f32[32,4], index: 2, kind: input, shape index: {}]   ;;  %s3601_s4 = inlined_call_operand.vmem [shape: bf16[576,64], index: 4, kind: input, shape index: {}]   ;;  %s3602_s6 = inlined_call_operand.vmem [shape: f32[64,1], index: 6, kind: input, shape index: {}]   ;;  %s3603_s8 = inlined_call_operand.vmem [shape: f32[4,1], index: 8, kind: input, shape index: {}]   ;;  %s3604_s7 = inlined_call_operand.vmem [shape: f32[4,32], index: 7, kind: input, shape index: {}]   ;;  %s3605_s9 = inlined_call_operand.vmem [shape: f32[4,128], index: 9, kind: output, shape index: {}]  }
   0x1   :  { %v2704_v0 = vld [vmem:[%s3596_s1 + $0x40] sm:$0xff]   ;;  %v2714_v2 = vld [vmem:[%s3596_s1 + $0x48] sm:$0xff]   ;;  %2563 = vset.pattern.permute.xlu1 %v2646_v3  ;;  %2562 = vset.pattern.permute.xlu0 %v2646_v3  ;;  %v2727_v5 = vld [vmem:[%s3596_s1 + $0x50] sm:$0xff]   ;;  %vm2649_vm3 = vmmov 0   ;;  %vm1682_vm4 = vcmask 261120  }
   0x2   :  { %v2709_v1 = vld [vmem:[%s3596_s1] sm:$0xff]   ;;  %2402 = vmatprep.subr.bf16.mxu0 %v2704_v0  ;;  %v2722_v4 = vld [vmem:[%s3596_s1 + $0x8] sm:$0xff]   ;;  %v2740_v9 = vld [vmem:[%s3596_s1 + $0x10] sm:$0xff]  }
   0x3   :  { %2404 = vmatpush3.bf16.msra.mxu0 %v2709_v1  ;;  %v322_v6 = vld [vmem:[%s3597_s0] sm:$0xff]  ;;  %v2745_v10 = vld [vmem:[%s3596_s1 + $0x58] sm:$0xff]   ;;  %v273_v14 = vld [vmem:[%s3598_s5 + $0xc8] sm:$0xff] }
   0x4   :  { %2406 = vmatprep.subr.bf16.mxu0 %v2714_v2  ;;  %v324_v7 = vcombine.high %v322_v6, %v322_v6  ;;  %v272_v8 = vld [vmem:[%s3598_s5 + $0xc0] sm:$0xff]  ;;  %v2755_v12 = vld [vmem:[%s3596_s1 + $0x18] sm:$0xff]   ;;  %v2775_v16 = vld [vmem:[%s3596_s1 + $0x68] sm:$0xff]  }
   0x5   :  { %835 = vperm.xlu1 %2563, %v272_v8   ;;  %v256_v11 = vld [vmem:[%s3598_s5 + $0x40] sm:$0xff]  ;;  %v247_v17 = vld [vmem:[%s3599_s3 + $0x18] sm:$0xff]  ;;  %v2785_v18 = vld [vmem:[%s3596_s1 + $0x28] sm:$0xff]  }
   0x6   :  { %390 = vmatprep.mubr.f32.mxu0 %v324_v7  ;;  %v2760_v13 = vld [vmem:[%s3596_s1 + $0x60] sm:$0xff]   ;;  %v2790_v19 = vld [vmem:[%s3596_s1 + $0x70] sm:$0xff]   ;;  %v2805_v22 = vld [vmem:[%s3596_s1 + $0x78] sm:$0xff]  }
   0x7   :  { %2408 = vmatpush3.bf16.msra.mxu0 %v2722_v4  ;;  %v2770_v15 = vld [vmem:[%s3596_s1 + $0x20] sm:$0xff]   ;;  %v258_v20 = vld [vmem:[%s3598_s5 + $0x50] sm:$0xff]  ;;  %v2815_v24 = vld [vmem:[%s3596_s1 + $0x38] sm:$0xff]  }
   0x8   :  { %2410 = vmatprep.subr.bf16.mxu0 %v2727_v5  ;;  %v2800_v21 = vld [vmem:[%s3596_s1 + $0x30] sm:$0xff]   ;;  %v304_v23 = vld [vmem:[%s3598_s5 + $0x1c0] sm:$0xff]  ;;  %v305_v26 = vld [vmem:[%s3598_s5 + $0x1c8] sm:$0xff] }
   0x9   :  { %739 = vperm.xlu1 %2563, %v256_v11   ;;  %v288_v25 = vld [vmem:[%s3598_s5 + $0x140] sm:$0xff]  ;;  %v289_v27 = vld [vmem:[%s3598_s5 + $0x148] sm:$0xff]  ;;  %v306_v28 = vld [vmem:[%s3598_s5 + $0x1d0] sm:$0xff] }
   0xa   :  { %v290_v29 = vld [vmem:[%s3598_s5 + $0x150] sm:$0xff]  ;;  %v240_v30 = vld [vmem:[%s3600_s2] sm:$0xff]  ;;  %v307_v31 = vld [vmem:[%s3598_s5 + $0x1d8] sm:$0xff] }
   0xb   :  { %2412 = vmatpush3.bf16.msra.mxu0 %v2740_v9  ;;  %2337 = vmatprep.mubr.msk.f32.mxu1 %vm416_vm0, %v240_v30  ;;  %v244_v32 = vld [vmem:[%s3599_s3] sm:$0xff]  ;;  %v291_v33 = vld [vmem:[%s3598_s5 + $0x158] sm:$0xff]  ;;  %v245_v34 = vld [vmem:[%s3599_s3 + $0x8] sm:$0xff] }
   0xc   :  { %2414 = vmatprep.subr.bf16.mxu0 %v2745_v10  ;;  %398 = vperm.xlu0 %2562, %v244_v32   ;;  %v308_v35 = vld [vmem:[%s3598_s5 + $0x1e0] sm:$0xff]  ;;  %v246_v36 = vld [vmem:[%s3599_s3 + $0x10] sm:$0xff]  ;;  %v257_v38 = vld [vmem:[%s3598_s5 + $0x48] sm:$0xff] }
   0xd   :  { %840 = vperm.xlu1 %2563, %v273_v14   ;;  %v292_v37 = vld [vmem:[%s3598_s5 + $0x160] sm:$0xff]  ;;  %v293_v39 = vld [vmem:[%s3598_s5 + $0x168] sm:$0xff]  ;;  %v274_v40 = vld [vmem:[%s3598_s5 + $0xd0] sm:$0xff] }
   0xe   :  { %v294_v41 = vld [vmem:[%s3598_s5 + $0x170] sm:$0xff]  ;;  %v275_v42 = vld [vmem:[%s3598_s5 + $0xd8] sm:$0xff]  ;;  %v248_v45 = vld [vmem:[%s3598_s5] sm:$0xff] }
   0xf   :  { %2416 = vmatpush3.bf16.msra.mxu0 %v2755_v12  ;;  %v295_v43 = vld [vmem:[%s3598_s5 + $0x178] sm:$0xff]  ;;  %v276_v46 = vld [vmem:[%s3598_s5 + $0xe0] sm:$0xff]  ;;  %v249_v47 = vld [vmem:[%s3598_s5 + $0x8] sm:$0xff] }
  0x10   :  { %2418 = vmatprep.subr.bf16.mxu0 %v2760_v13  ;;  %403 = vperm.xlu0 %2562, %v245_v34   ;;  %v259_v44 = vld [vmem:[%s3598_s5 + $0x58] sm:$0xff]  ;;  %v260_v48 = vld [vmem:[%s3598_s5 + $0x60] sm:$0xff]  ;;  %v250_v49 = vld [vmem:[%s3598_s5 + $0x10] sm:$0xff] }
  0x11   :  { %413 = vperm.xlu1 %2563, %v247_v17   ;;  %v277_v50 = vld [vmem:[%s3598_s5 + $0xe8] sm:$0xff]  ;;  %v267_v51 = vld [vmem:[%s3598_s5 + $0x98] sm:$0xff]  ;;  %v278_v54 = vld [vmem:[%s3598_s5 + $0xf0] sm:$0xff] }
  0x12   :  { %v261_v52 = vld [vmem:[%s3598_s5 + $0x68] sm:$0xff]  ;;  %v251_v53 = vld [vmem:[%s3598_s5 + $0x18] sm:$0xff]  ;;  %v262_v56 = vld [vmem:[%s3598_s5 + $0x70] sm:$0xff] }
  0x13   :  { %2420 = vmatpush3.bf16.msra.mxu0 %v2770_v15  ;;  %v297_v55 = vld [vmem:[%s3598_s5 + $0x188] sm:$0xff]  ;;  %v279_v58 = vld [vmem:[%s3598_s5 + $0xf8] sm:$0xff]  ;;  %v270_v63 = vld [vmem:[%s3598_s5 + $0xb0] sm:$0xff] }
  0x14   :  { %2422 = vmatprep.subr.bf16.mxu0 %v2775_v16  ;;  %408 = vperm.xlu0 %2562, %v246_v36   ;;  %v281_v57 = vld [vmem:[%s3598_s5 + $0x108] sm:$0xff]  ;;  %v263_v60 = vld [vmem:[%s3598_s5 + $0x78] sm:$0xff]  ;;  %v310_v3 = vld [vmem:[%s3598_s5 + $0x1f0] sm:$0xff] }
  0x15   :  { %749 = vperm.xlu1 %2563, %v258_v20   ;;  %v269_v59 = vld [vmem:[%s3598_s5 + $0xa8] sm:$0xff]  ;;  %v311_v7 = vld [vmem:[%s3598_s5 + $0x1f8] sm:$0xff]  ;;  %v264_v11 = vld [vmem:[%s3598_s5 + $0x80] sm:$0xff] }
  0x16   :  { %v253_v61 = vld [vmem:[%s3598_s5 + $0x28] sm:$0xff]  ;;  %v271_v8 = vld [vmem:[%s3598_s5 + $0xb8] sm:$0xff]  ;;  %v314_v32 = vld [vmem:[%s3598_s5 + $0x210] sm:$0xff] }
  0x17   :  { %2424 = vmatpush3.bf16.msra.mxu0 %v2785_v18  ;;  %v309_v62 = vld [vmem:[%s3598_s5 + $0x1e8] sm:$0xff]  ;;  %v255_v14 = vld [vmem:[%s3598_s5 + $0x38] sm:$0xff]  ;;  %v282_v34 = vld [vmem:[%s3598_s5 + $0x110] sm:$0xff] }
  0x18   :  { %2426 = vmatprep.subr.bf16.mxu0 %v2790_v19  ;;  %744 = vperm.xlu0 %2562, %v257_v38   ;;  %v265_v17 = vld [vmem:[%s3598_s5 + $0x88] sm:$0xff]  ;;  %v283_v36 = vld [vmem:[%s3598_s5 + $0x118] sm:$0xff]  ;;  %v284_v38 = vld [vmem:[%s3598_s5 + $0x120] sm:$0xff] }
  0x19   :  { %1027 = vperm.xlu1 %2563, %v304_v23   ;;  %v301_v20 = vld [vmem:[%s3598_s5 + $0x1a8] sm:$0xff]  ;;  %v266_v23 = vld [vmem:[%s3598_s5 + $0x90] sm:$0xff] }
  0x1b   :  { %2428 = vmatpush3.bf16.msra.mxu0 %v2800_v21 }
  0x1c   :  { %2430 = vmatprep.subr.bf16.mxu0 %v2805_v22  ;;  %845 = vperm.xlu0 %2562, %v274_v40   ;;  %v285_v40 = vld [vmem:[%s3598_s5 + $0x128] sm:$0xff] }
  0x1d   :  { %931 = vperm.xlu1 %2563, %v288_v25   ;;  %v312_v25 = vld [vmem:[%s3598_s5 + $0x200] sm:$0xff] }
  0x1f   :  { %2432 = vmatpush3.bf16.msra.mxu0 %v2815_v24 }
  0x20   :  { %850 = vperm.xlu0 %2562, %v275_v42  }
  0x21   :  { %1032 = vperm.xlu1 %2563, %v305_v26   ;;  %v296_v26 = vld [vmem:[%s3598_s5 + $0x180] sm:$0xff] }
  0x22   :  { %391 = vmatmul.mubr.f32.vlgmr.msra.gmra.mrb[0].mxu0 %v322_v6  ;;  %v254_v6 = vld [vmem:[%s3598_s5 + $0x30] sm:$0xff] }
  0x23   :  { %2345 = vmatprep.mubr.msk.f32.mxu0 %vm416_vm0, %v240_v30  ;;  %v302_v30 = vld [vmem:[%s3598_s5 + $0x1b0] sm:$0xff] }
  0x24   :  { %754 = vperm.xlu0 %2562, %v259_v44   ;;  %v1843_v44 = vld [vmem:[%s3597_s0 + $0x8] sm:$0xff] }
  0x25   :  { %936 = vperm.xlu1 %2563, %v289_v27   ;;  %v313_v27 = vld [vmem:[%s3598_s5 + $0x208] sm:$0xff] }
  0x28   :  { %855 = vperm.xlu0 %2562, %v276_v46   ;;  %v286_v46 = vld [vmem:[%s3598_s5 + $0x130] sm:$0xff] }
  0x29   :  { %1037 = vperm.xlu1 %2563, %v306_v28   ;;  %v280_v28 = vld [vmem:[%s3598_s5 + $0x100] sm:$0xff] }
  0x2c   :  { %759 = vperm.xlu0 %2562, %v260_v48   ;;  %v525_v48 = vcombine.high %v1843_v44, %v1843_v44 }
  0x2d   :  { %941 = vperm.xlu1 %2563, %v290_v29   ;;  %v268_v29 = vld [vmem:[%s3598_s5 + $0xa0] sm:$0xff] }
  0x30   :  { %860 = vperm.xlu0 %2562, %v277_v50  }
  0x31   :  { %1042 = vperm.xlu1 %2563, %v307_v31   ;;  %v252_v31 = vld [vmem:[%s3598_s5 + $0x20] sm:$0xff] }
  0x34   :  { %764 = vperm.xlu0 %2562, %v261_v52  }
  0x35   :  { %946 = vperm.xlu1 %2563, %v291_v33   ;;  %v298_v33 = vld [vmem:[%s3598_s5 + $0x190] sm:$0xff] }
  0x38   :  { %865 = vperm.xlu0 %2562, %v278_v54  }
  0x39   :  { %1047 = vperm.xlu1 %2563, %v308_v35   ;;  %v299_v35 = vld [vmem:[%s3598_s5 + $0x198] sm:$0xff] }
  0x3c   :  { %769 = vperm.xlu0 %2562, %v262_v56  }
  0x3d   :  { %951 = vperm.xlu1 %2563, %v292_v37   ;;  %v300_v37 = vld [vmem:[%s3598_s5 + $0x1a0] sm:$0xff] }
  0x40   :  { %870 = vperm.xlu0 %2562, %v279_v58  }
  0x41   :  { %956 = vperm.xlu1 %2563, %v293_v39  }
  0x44   :  { %774 = vperm.xlu0 %2562, %v263_v60  }
  0x45   :  { %961 = vperm.xlu1 %2563, %v294_v41  }
  0x48   :  { %1052 = vperm.xlu0 %2562, %v309_v62  }
  0x49   :  { %966 = vperm.xlu1 %2563, %v295_v43   ;;  %v3014_v43 = vld [vmem:[%s3600_s2 + $0x8] sm:$0xff] }
  0x4c   :  { %1057 = vperm.xlu0 %2562, %v310_v3  }
  0x4d   :  { %691 = vperm.xlu1 %2563, %v248_v45   ;;  %v3024_v45 = vld [vmem:[%s3600_s2 + $0x10] sm:$0xff] }
  0x50   :  { %1062 = vperm.xlu0 %2562, %v311_v7  }
  0x51   :  { %696 = vperm.xlu1 %2563, %v249_v47   ;;  %v3040_v47 = vld [vmem:[%s3600_s2 + $0x18] sm:$0xff] }
  0x54   :  { %787 = vperm.xlu0 %2562, %v264_v11  }
  0x55   :  { %701 = vperm.xlu1 %2563, %v250_v49   ;;  %v2086_v49 = vld [vmem:[%s3601_s4 + $0x28] sm:$0xff]  }
  0x58   :  { %792 = vperm.xlu0 %2562, %v265_v17  }
  0x59   :  { %802 = vperm.xlu1 %2563, %v267_v51   ;;  %v2095_v51 = vld [vmem:[%s3601_s4 + $0x70] sm:$0xff]  }
  0x5c   :  { %797 = vperm.xlu0 %2562, %v266_v23  }
  0x5d   :  { %706 = vperm.xlu1 %2563, %v251_v53   ;;  %v2087_v53 = vld [vmem:[%s3601_s4 + $0x30] sm:$0xff]  }
  0x60   :  { %979 = vperm.xlu0 %2562, %v296_v26   ;;  %v2096_v26 = vld [vmem:[%s3601_s4 + $0x78] sm:$0xff]  }
  0x61   :  { %984 = vperm.xlu1 %2563, %v297_v55  }
  0x64   :  { %883 = vperm.xlu0 %2562, %v280_v28  }
  0x65   :  { %888 = vperm.xlu1 %2563, %v281_v57  }
  0x68   :  { %807 = vperm.xlu0 %2562, %v268_v29  }
  0x69   :  { %812 = vperm.xlu1 %2563, %v269_v59  }
  0x6c   :  { %711 = vperm.xlu0 %2562, %v252_v31  }
  0x6d   :  { %716 = vperm.xlu1 %2563, %v253_v61  }
  0x70   :  { %989 = vperm.xlu0 %2562, %v298_v33  }
  0x71   :  { %817 = vperm.xlu1 %2563, %v270_v63  }
  0x74   :  { %893 = vperm.xlu0 %2562, %v282_v34  }
  0x75   :  { %721 = vperm.xlu1 %2563, %v254_v6  }
  0x78   :  { %994 = vperm.xlu0 %2562, %v299_v35  }
  0x79   :  { %822 = vperm.xlu1 %2563, %v271_v8  }
  0x7c   :  { %898 = vperm.xlu0 %2562, %v283_v36  }
  0x7d   :  { %726 = vperm.xlu1 %2563, %v255_v14  }
  0x80   :  { %999 = vperm.xlu0 %2562, %v300_v37  }
  0x81   :  { %1004 = vperm.xlu1 %2563, %v301_v20  }
  0x84   :  { %903 = vperm.xlu0 %2562, %v284_v38  }
  0x85   :  { %1075 = vperm.xlu1 %2563, %v312_v25  }
  0x88   :  { %908 = vperm.xlu0 %2562, %v285_v40  }
  0x89   :  { %1080 = vperm.xlu1 %2563, %v313_v27   ;;  %v2088_v27 = vld [vmem:[%s3601_s4 + $0x38] sm:$0xff]  }
  0x8c   :  { %913 = vperm.xlu0 %2562, %v286_v46  }
  0x8d   :  { %1009 = vperm.xlu1 %2563, %v302_v30  }
  0x91   :  { %1085 = vperm.xlu1 %2563, %v314_v32  }
  0xf5   :  { %v2149_v39 = vpop.f32.mrb[0].mxu0 }
  0xf6   :  { %v2150_v41 = vpop.f32.mrb[1].mxu0 }
  0xf7   :  { %v3009_v42 = vadd.f32 %v2150_v41, %v2149_v39 }
  0xf9   :  { %3608 = vst [vmem:[#allocation2_spill] sm:$0xff] %v3009_v42  ;;  %2335 = vmatprep.subr.msk.mxu1 %vm429_vm1, %v3009_v42 }
  0xfa   :  { %2336 = vmatpush3.msk.msra.mxu1 %vm429_vm1, %v3009_v42 }
  0xfb   :  { %2338 = vmatmul.mubr.msk.f32.vlgmr.msra.gmra.mrb[0].mxu1 %vm416_vm0, %v3014_v43  ;;  %2434 = vmatprep.subr.bf16.mxu1 %v2704_v0  ;;  %v3058_v0 = vpop.permute.xlu1 %835 }
  0xfc   :  { %2436 = vmatpush3.bf16.msra.mxu1 %v2709_v1  ;;  %2340 = vmatprep.mubr.msk.f32.mxu1 %vm416_vm0, %v3024_v45  ;;  %v2089_v1 = vld [vmem:[%s3601_s4 + $0x40] sm:$0xff]  }
  0xfd   :  { %2438 = vmatprep.subr.bf16.mxu1 %v2714_v2  ;;  %v1924_v2 = vld [vmem:[%s3601_s4] sm:$0xff]  }
  0xff   :  { %2341 = vmatmul.mubr.msk.f32.gmra.mrb[2].mxu1 %vm416_vm0, %v3040_v47 }
 0x100   :  { %2440 = vmatpush3.bf16.msra.mxu1 %v2722_v4  ;;  %591 = vmatprep.mubr.f32.mxu1 %v525_v48  ;;  %v2090_v4 = vld [vmem:[%s3601_s4 + $0x48] sm:$0xff]  }
 0x101   :  { %2442 = vmatprep.subr.bf16.mxu1 %v2727_v5  ;;  %v3069_v5 = vpop.permute.xlu1 %739 }
 0x104   :  { %2444 = vmatpush3.bf16.msra.mxu1 %v2740_v9  ;;  %v2082_v9 = vld [vmem:[%s3601_s4 + $0x8] sm:$0xff]  }
 0x105   :  { %2446 = vmatprep.subr.bf16.mxu1 %v2745_v10  ;;  %v2091_v10 = vld [vmem:[%s3601_s4 + $0x50] sm:$0xff]  }
 0x108   :  { %2448 = vmatpush3.bf16.msra.mxu1 %v2755_v12  ;;  %v2083_v12 = vld [vmem:[%s3601_s4 + $0x10] sm:$0xff]  }
 0x109   :  { %2450 = vmatprep.subr.bf16.mxu1 %v2760_v13  ;;  %v841_v13 = vpop.permute.xlu1 %840 }
 0x10c   :  { %2452 = vmatpush3.bf16.msra.mxu1 %v2770_v15  ;;  %v2092_v15 = vld [vmem:[%s3601_s4 + $0x58] sm:$0xff]  }
 0x10d   :  { %2454 = vmatprep.subr.bf16.mxu1 %v2775_v16  ;;  %v2084_v16 = vld [vmem:[%s3601_s4 + $0x18] sm:$0xff]  }
 0x110   :  { %2456 = vmatpush3.bf16.msra.mxu1 %v2785_v18  ;;  %v2093_v18 = vld [vmem:[%s3601_s4 + $0x60] sm:$0xff]  }
 0x111   :  { %2458 = vmatprep.subr.bf16.mxu1 %v2790_v19  ;;  %v3089_v19 = vpop.permute.xlu1 %413 }
 0x114   :  { %2460 = vmatpush3.bf16.msra.mxu1 %v2800_v21  ;;  %v3091_v21 = vpop.permute.xlu0 %398 }
 0x115   :  { %2462 = vmatprep.subr.bf16.mxu1 %v2805_v22  ;;  %v2085_v22 = vld [vmem:[%s3601_s4 + $0x20] sm:$0xff]   ;;  %v750_v50 = vpop.permute.xlu1 %749 }
 0x118   :  { %2464 = vmatpush3.bf16.msra.mxu1 %v2815_v24  ;;  %v2094_v24 = vld [vmem:[%s3601_s4 + $0x68] sm:$0xff]   ;;  %v3105_v52 = vpop.permute.xlu0 %403 }
 0x119   :  { %2466 = vmatprep.subr.bf16.mxu1 %v2089_v1  ;;  %v1028_v54 = vpop.permute.xlu1 %1027 }
 0x11b   :  { %592 = vmatmul.mubr.f32.vlgmr.msra.gmra.mrb[4].mxu1 %v1843_v44 }
 0x11c   :  { %2468 = vmatpush3.bf16.msra.mxu1 %v1924_v2  ;;  %v3110_v55 = vpop.permute.xlu0 %408 }
 0x11d   :  { %2470 = vmatprep.subr.bf16.mxu1 %v2090_v4  ;;  %v932_v56 = vpop.permute.xlu1 %931 }
 0x120   :  { %2472 = vmatpush3.bf16.msra.mxu1 %v2082_v9  ;;  %v745_v57 = vpop.permute.xlu0 %744 }
 0x121   :  { %2474 = vmatprep.subr.bf16.mxu1 %v2091_v10  ;;  %v3112_v58 = vpop.permute.xlu1 %1032 }
 0x124   :  { %2476 = vmatpush3.bf16.msra.mxu1 %v2083_v12  ;;  %v846_v59 = vpop.permute.xlu0 %845 }
 0x125   :  { %2478 = vmatprep.subr.bf16.mxu1 %v2092_v15  ;;  %v3114_v60 = vpop.permute.xlu1 %936 }
 0x128   :  { %2480 = vmatpush3.bf16.msra.mxu1 %v2084_v16  ;;  %v851_v61 = vpop.permute.xlu0 %850 }
 0x129   :  { %2482 = vmatprep.subr.bf16.mxu1 %v2093_v18  ;;  %v3116_v62 = vpop.permute.xlu1 %1037 }
 0x12c   :  { %2484 = vmatpush3.bf16.msra.mxu1 %v2085_v22  ;;  %v755_v63 = vpop.permute.xlu0 %754 }
 0x12d   :  { %2486 = vmatprep.subr.bf16.mxu1 %v2094_v24  ;;  %v3118_v3 = vpop.permute.xlu1 %941 }
 0x130   :  { %2488 = vmatpush3.bf16.msra.mxu1 %v2086_v49  ;;  %v3120_v6 = vpop.permute.xlu0 %855 }
 0x131   :  { %2490 = vmatprep.subr.bf16.mxu1 %v2095_v51  ;;  %v3122_v7 = vpop.permute.xlu1 %1042 }
 0x134   :  { %2492 = vmatpush3.bf16.msra.mxu1 %v2087_v53  ;;  %v3124_v8 = vpop.permute.xlu0 %759 }
 0x135   :  { %v3126_v11 = vpop.permute.xlu1 %946  ;;  %2494 = vmatprep.subr.bf16.mxu1 %v2096_v26 }
 0x138   :  { %v3128_v14 = vpop.permute.xlu0 %860  ;;  %2496 = vmatpush3.bf16.msra.mxu1 %v2088_v27  ;;  %v2105_v27 = vld [vmem:[%s3601_s4 + $0xc0] sm:$0xff]  }
 0x139   :  { %v3130_v17 = vpop.permute.xlu1 %1047 }
 0x13c   :  { %v3132_v20 = vpop.permute.xlu0 %764 }
 0x13d   :  { %v3134_v23 = vpop.permute.xlu1 %951 }
 0x140   :  { %v3136_v25 = vpop.permute.xlu0 %865 }
 0x141   :  { %v3144_v29 = vpop.permute.xlu1 %956 }
 0x144   :  { %v3147_v32 = vpop.permute.xlu0 %769 }
 0x145   :  { %v3162_v48 = vpop.permute.xlu1 %961 }
 0x148   :  { %v3166_v4 = vpop.permute.xlu0 %870 }
 0x149   :  { %v3178_v24 = vpop.permute.xlu1 %966 }
 0x14c   :  { %v3181_v49 = vpop.permute.xlu0 %774 }
 0x14d   :  { %v3185_v53 = vpop.permute.xlu1 %691 }
 0x1ce   :  { %v2339_v28 = vpop.f32.mrb[0].mxu1 }
 0x1cf   :  { %v505_v30 = vadd.f32 %v2339_v28, %v3105_v52  ;;  %v499_v31 = vpop.f32.mrb[1].mxu1  ;;  %v2097_v28 = vld [vmem:[%s3601_s4 + $0x80] sm:$0xff]  }
 0x1d0   :  { %v500_v33 = vadd.f32 %v499_v31, %v3091_v21  ;;  %v2106_v31 = vld [vmem:[%s3601_s4 + $0xc8] sm:$0xff]  }
 0x1d1   :  { %v3150_v34 = vmax.f32 %v505_v30, 0.0 }
 0x1d2   :  { %v3152_v35 = vmax.f32 %v500_v33, 0.0  ;;  %v2342_v36 = vpop.f32.mrb[2].mxu1 }
 0x1d3   :  { %v515_v37 = vadd.f32 %v2342_v36, %v3089_v19  ;;  %v778_v38 = vmul.f32 %v745_v57, %v3150_v34  ;;  %v874_v39 = vmul.f32 %v841_v13, %v3150_v34  ;;  %v509_v40 = vpop.f32.mrb[3].mxu1  ;;  %v2098_v36 = vld [vmem:[%s3601_s4 + $0x88] sm:$0xff]  }
 0x1d4   :  { %v510_v41 = vadd.f32 %v509_v40, %v3110_v55  ;;  %v777_v44 = vmul.f32 %v3069_v5, %v3152_v35  ;;  %v873_v46 = vmul.f32 %v3058_v0, %v3152_v35  ;;  %v1065_v5 = vmul.f32 %v1028_v54, %v3152_v35  ;;  %v3187_v54 = vpop.permute.xlu0 %1052  ;;  %v2100_v40 = vld [vmem:[%s3601_s4 + $0x98] sm:$0xff]  }
 0x1d5   :  { %v3164_v1 = vmax.f32 %v515_v37, 0.0  ;;  %v2564_v2 = vpack.i.bf16 %v778_v38, %v874_v39  ;;  %v969_v0 = vmul.f32 %v932_v56, %v3152_v35  ;;  %v2107_v37 = vld [vmem:[%s3601_s4 + $0xd0] sm:$0xff]   ;;  %v2108_v39 = vld [vmem:[%s3601_s4 + $0xd8] sm:$0xff]  }
 0x1d6   :  { %v3168_v9 = vmax.f32 %v510_v41, 0.0  ;;  %v2569_v10 = vpack.i.bf16 %v777_v44, %v873_v46  ;;  %v2109_v41 = vld [vmem:[%s3601_s4 + $0xe0] sm:$0xff]  }
 0x1d7   :  { %2565 = vrot.lane.b32.xlu1 %v2564_v2, %s2647_s17  ;;  %v876_v12 = vmul.f32 %v851_v61, %v3164_v1  ;;  %v780_v13 = vmul.f32 %v755_v63, %v3164_v1  ;;  %v2101_v46 = vld [vmem:[%s3601_s4 + $0xa0] sm:$0xff]   ;;  %v2110_v2 = vld [vmem:[%s3601_s4 + $0xe8] sm:$0xff]  }
 0x1d8   :  { %2570 = vrot.lane.b32.xlu0 %v2569_v10, %s2647_s17  ;;  %v779_v15 = vmul.f32 %v750_v50, %v3168_v9  ;;  %v875_v16 = vmul.f32 %v846_v59, %v3168_v9  ;;  %v3189_v50 = vpop.permute.xlu1 %696  ;;  %v3191_v56 = vpop.permute.xlu0 %1057 }
 0x1d9   :  { %v2574_v18 = vpack.i.bf16 %v1065_v5, %v876_v12  ;;  %v2579_v22 = vpack.i.bf16 %v969_v0, %v780_v13  ;;  %v2102_v5 = vld [vmem:[%s3601_s4 + $0xa8] sm:$0xff]   ;;  %v2111_v13 = vld [vmem:[%s3601_s4 + $0xf0] sm:$0xff]  }
 0x1da   :  { %v2584_v51 = vpack.i.bf16 %v779_v15, %v875_v16  ;;  %v2103_v0 = vld [vmem:[%s3601_s4 + $0xb0] sm:$0xff]   ;;  %v2112_v16 = vld [vmem:[%s3601_s4 + $0xf8] sm:$0xff]  }
 0x1db   :  { %2575 = vrot.lane.b32.xlu1 %v2574_v18, %s2647_s17 }
 0x1dc   :  { %2580 = vrot.lane.b32.xlu0 %v2579_v22, %s2647_s17  ;;  %v3193_v57 = vpop.permute.xlu1 %701  ;;  %v3195_v59 = vpop.permute.xlu0 %1062  ;;  %v2104_v22 = vld [vmem:[%s3601_s4 + $0xb8] sm:$0xff]  }
 0x1e0   :  { %2585 = vrot.lane.b32.xlu0 %v2584_v51, %s2647_s17  ;;  %v3207_v30 = vpop.permute.xlu1 %802  ;;  %v3214_v33 = vpop.permute.xlu0 %787 }
 0x1e4   :  { %v3228_v38 = vpop.permute.xlu1 %706 }
 0x1ee   :  { %v2189_v61 = vpop.f32.mrb[4].mxu1 }
 0x1ef   :  { %v2190_v63 = vpop.f32.mrb[5].mxu1 }
 0x1f0   :  { %v3197_v26 = vadd.f32 %v2190_v63, %v2189_v61 }
 0x1f2   :  { %3609 = vst [vmem:[#allocation3_spill] sm:$0xff] %v3197_v26  ;;  %2343 = vmatprep.subr.msk.mxu0 %vm429_vm1, %v3197_v26 }
 0x1f3   :  { %2344 = vmatpush3.msk.msra.mxu0 %vm429_vm1, %v3197_v26 }
 0x1f4   :  { %2346 = vmatmul.mubr.msk.f32.vlgmr.msra.gmra.mrb[2].mxu0 %vm416_vm0, %v3014_v43  ;;  %2498 = vmatprep.subr.bf16.mxu0 %v2105_v27  ;;  %v793_v43 = vpop.permute.xlu0 %792 }
 0x1f5   :  { %2348 = vmatprep.mubr.msk.f32.mxu0 %vm416_vm0, %v3024_v45  ;;  %2500 = vmatpush3.bf16.msra.mxu0 %v2097_v28  ;;  %v2099_v45 = vld [vmem:[%s3601_s4 + $0x90] sm:$0xff]  }
 0x1f6   :  { %2502 = vmatprep.subr.bf16.mxu0 %v2106_v31 }
 0x1f8   :  { %2349 = vmatmul.mubr.msk.f32.gmra.mrb[4].mxu0 %vm416_vm0, %v3040_v47  ;;  %v3239_v47 = vpop.permute.xlu1 %984  ;;  %v3244_v44 = vpop.permute.xlu0 %797 }
 0x1f9   :  { %2504 = vmatpush3.bf16.msra.mxu0 %v2098_v36 }
 0x1fa   :  { %2506 = vmatprep.subr.bf16.mxu0 %v2107_v37 }
 0x1fc   :  { %v3252_v10 = vpop.permute.xlu1 %888  ;;  %v980_v12 = vpop.permute.xlu0 %979 }
 0x1fd   :  { %2508 = vmatpush3.bf16.msra.mxu0 %v2099_v45 }
 0x1fe   :  { %2510 = vmatprep.subr.bf16.mxu0 %v2108_v39 }
 0x200   :  { %v3263_v15 = vpop.permute.xlu1 %812  ;;  %v884_v18 = vpop.permute.xlu0 %883 }
 0x201   :  { %2512 = vmatpush3.bf16.msra.mxu0 %v2100_v40 }
 0x202   :  { %2514 = vmatprep.subr.bf16.mxu0 %v2109_v41 }
 0x204   :  { %v3271_v51 = vpop.permute.xlu0 %807  ;;  %v3273_v61 = vpop.permute.xlu1 %716 }
 0x205   :  { %2516 = vmatpush3.bf16.msra.mxu0 %v2101_v46 }
 0x206   :  { %2518 = vmatprep.subr.bf16.mxu0 %v2110_v2 }
 0x208   :  { %v3275_v63 = vpop.permute.xlu0 %711  ;;  %v3277_v27 = vpop.permute.xlu1 %817 }
 0x209   :  { %2520 = vmatpush3.bf16.msra.mxu0 %v2102_v5  ;;  %3610 = vst [vmem:[#allocation4_spill] sm:$0xff] %v3277_v27  ;;  %v921_v27 = vmul.f32 %v884_v18, %v3152_v35 }
 0x20a   :  { %2522 = vmatprep.subr.bf16.mxu0 %v2111_v13 }
 0x20c   :  { %v3279_v28 = vpop.permute.xlu0 %989  ;;  %v3281_v31 = vpop.permute.xlu1 %721 }
 0x20d   :  { %2524 = vmatpush3.bf16.msra.mxu0 %v2103_v0  ;;  %3611 = vst [vmem:[#allocation5_spill] sm:$0xff] %v3281_v31 }
 0x20e   :  { %2526 = vmatprep.subr.bf16.mxu0 %v2112_v16 }
 0x210   :  { %v3283_v36 = vpop.permute.xlu0 %893  ;;  %v3285_v37 = vpop.permute.xlu1 %822 }
 0x211   :  { %2528 = vmatpush3.bf16.msra.mxu0 %v2104_v22  ;;  %3612 = vst [vmem:[#allocation6_spill] sm:$0xff] %v3285_v37 }
 0x214   :  { %v3287_v45 = vpop.permute.xlu0 %994  ;;  %v3289_v39 = vpop.permute.xlu1 %726 }
 0x215   :  { %3613 = vst [vmem:[#allocation7_spill] sm:$0xff] %v3287_v45  ;;  %3614 = vst [vmem:[#allocation8_spill] sm:$0xff] %v3289_v39 }
 0x218   :  { %v3291_v40 = vpop.permute.xlu0 %898  ;;  %v3293_v41 = vpop.permute.xlu1 %1004 }
 0x219   :  { %3615 = vst [vmem:[#allocation9_spill] sm:$0xff] %v3291_v40  ;;  %3616 = vst [vmem:[#allocation10_spill] sm:$0xff] %v3293_v41  ;;  %v825_v41 = vmul.f32 %v3214_v33, %v3152_v35  ;;  %v1017_v33 = vmul.f32 %v980_v12, %v3152_v35  ;;  %v827_v12 = vmul.f32 %v3244_v44, %v3168_v9 }
 0x21a   :  { %v732_v44 = vmul.f32 %v3228_v38, %v3164_v1  ;;  %v1067_v38 = vmul.f32 %v3116_v62, %v3168_v9  ;;  %v1066_v62 = vmul.f32 %v3112_v58, %v3150_v34  ;;  %v315_v58 = vld [vmem:[%s3598_s5 + $0x218] sm:$0xff] }
 0x21c   :  { %v3295_v46 = vpop.permute.xlu0 %999  ;;  %v3297_v2 = vpop.permute.xlu1 %1075 }
 0x21d   :  { %3617 = vst [vmem:[#allocation11_spill] sm:$0xff] %v3295_v46  ;;  %3618 = vst [vmem:[#allocation12_spill] sm:$0xff] %v3297_v2 }
 0x220   :  { %v3299_v5 = vpop.permute.xlu0 %903  ;;  %v3301_v13 = vpop.permute.xlu1 %1080 }
 0x221   :  { %3619 = vst [vmem:[#allocation13_spill] sm:$0xff] %v3299_v5  ;;  %3620 = vst [vmem:[#allocation14_spill] sm:$0xff] %v3301_v13  ;;  %v729_v13 = vmul.f32 %v3185_v53, %v3152_v35 }
 0x224   :  { %v3303_v0 = vpop.permute.xlu0 %908  ;;  %v3305_v16 = vpop.permute.xlu1 %1009 }
 0x225   :  { %3621 = vst [vmem:[#allocation15_spill] sm:$0xff] %v3303_v0  ;;  %3622 = vst [vmem:[#allocation16_spill] sm:$0xff] %v3305_v16 }
 0x228   :  { %v3307_v22 = vpop.permute.xlu0 %913  ;;  %v3309_v42 = vpop.permute.xlu1 %1085 }
 0x229   :  { %3623 = vst [vmem:[#allocation17_spill] sm:$0xff] %v3307_v22  ;;  %3624 = vst [vmem:[#allocation18_spill] sm:$0xff] %v3309_v42  ;;  %v826_v22 = vmul.f32 %v793_v43, %v3150_v34 }
 0x249   :  { %v2566_v26 = vpop.permute.xlu1 %2565 }
 0x24a   :  { %v2571_v39 = vpop.permute.xlu0 %2570  ;;  %v2567_v46 = vunpack.i.l.bf16 %v2566_v26  ;;  %v2568_v42 = vunpack.i.h.bf16 %v2566_v26 }
 0x24b   :  { %v2573_v2 = vunpack.i.h.bf16 %v2571_v39  ;;  %v2572_v37 = vunpack.i.l.bf16 %v2571_v39 }
 0x24c   :  { %v1259_v39 = vsel %vm1249_vm2, %v826_v22, %v2567_v46 }
 0x24d   :  { %v2576_v5 = vpop.permute.xlu1 %2575  ;;  %v1258_v0 = vsel %vm1249_vm2, %v825_v41, %v2572_v37  ;;  %v1250_v16 = vsel %vm1249_vm2, %v729_v13, %v2573_v2  ;;  %v730_v37 = vmul.f32 %v3189_v50, %v3150_v34 }
 0x24e   :  { %v2578_v31 = vunpack.i.h.bf16 %v2576_v5  ;;  %v2581_v40 = vpop.permute.xlu0 %2580  ;;  %1418 = vmatprep.mubr.f32.mxu1 %v1258_v0  ;;  %v2577_v18 = vunpack.i.l.bf16 %v2576_v5 }
 0x24f   :  { %v2583_v45 = vunpack.i.h.bf16 %v2581_v40  ;;  %1419 = vmatmul.mubr.f32.vlgmr.msra.gmra.mrb[6].mxu1 %v1250_v16  ;;  %v1251_v41 = vsel %vm1249_vm2, %v730_v37, %v2568_v42 }
 0x250   :  { %1423 = vmatprep.mubr.f32.mxu1 %v1259_v39  ;;  %v1274_v53 = vsel %vm1249_vm2, %v1017_v33, %v2578_v31  ;;  %v731_v31 = vmul.f32 %v3193_v57, %v3168_v9 }
 0x251   :  { %1523 = vmatprep.mubr.f32.mxu0 %v1274_v53  ;;  %v1266_v26 = vsel %vm1249_vm2, %v921_v27, %v2583_v45  ;;  %v828_v27 = vmul.f32 %v3207_v30, %v3164_v1  ;;  %v2582_v45 = vunpack.i.l.bf16 %v2581_v40 }
 0x252   :  { %v2586_v43 = vpop.permute.xlu0 %2585  ;;  %1524 = vmatmul.mubr.f32.vlgmr.msra.gmra.mrb[6].mxu0 %v1266_v26 }
 0x253   :  { %v2588_v2 = vunpack.i.h.bf16 %v2586_v43  ;;  %v2587_v13 = vunpack.i.l.bf16 %v2586_v43  ;;  %1424 = vmatmul.mubr.f32.gmra.mrb[8].mxu1 %v1251_v41  ;;  %v1261_v42 = vsel %vm1249_vm2, %v828_v27, %v2577_v18  ;;  %v1253_v5 = vsel %vm1249_vm2, %v732_v44, %v2582_v45  ;;  %v2113_v27 = vld [vmem:[%s3601_s4 + $0x100] sm:$0xff]  }
 0x254   :  { %2530 = vmatprep.subr.bf16.mxu1 %v2113_v27 }
 0x255   :  { %v1260_v46 = vsel %vm1249_vm2, %v827_v12, %v2587_v13  ;;  %v1252_v50 = vsel %vm1249_vm2, %v731_v31, %v2588_v2  ;;  %2532 = vmatpush3.bf16.msra.mxu1 %v2113_v27 }
 0x256   :  { %1428 = vmatprep.mubr.f32.mxu1 %v1260_v46 }
 0x257   :  { %1429 = vmatmul.mubr.f32.gmra.mrb[10].mxu1 %v1252_v50 }
 0x258   :  { %1433 = vmatprep.mubr.f32.mxu1 %v1261_v42 }
 0x25b   :  { %1434 = vmatmul.mubr.f32.gmra.mrb[12].mxu1 %v1253_v5 }
 0x2c7   :  { %v2347_v57 = vpop.f32.mrb[2].mxu0 }
 0x2c8   :  { %v672_v0 = vadd.f32 %v2347_v57, %v3105_v52  ;;  %v666_v16 = vpop.f32.mrb[3].mxu0  ;;  %v971_v52 = vmul.f32 %v3118_v3, %v3168_v9 }
 0x2c9   :  { %v667_v22 = vadd.f32 %v666_v16, %v3091_v21 }
 0x2ca   :  { %v3340_v33 = vmax.f32 %v672_v0, 0.0 }
 0x2cb   :  { %v3342_v30 = vmax.f32 %v667_v22, 0.0  ;;  %v2350_v40 = vpop.f32.mrb[4].mxu0  ;;  %v2116_v22 = vld [vmem:[%s3601_s4 + $0x118] sm:$0xff]  }
 0x2cc   :  { %v676_v39 = vpop.f32.mrb[5].mxu0  ;;  %v878_v53 = vmul.f32 %v3128_v14, %v3340_v33  ;;  %v782_v37 = vmul.f32 %v3132_v20, %v3340_v33  ;;  %v682_v21 = vadd.f32 %v2350_v40, %v3089_v19  ;;  %v287_v14 = vld [vmem:[%s3598_s5 + $0x138] sm:$0xff]  ;;  %v974_v5 = vmul.f32 %v3144_v29, %v3340_v33 }
 0x2cd   :  { %v877_v41 = vmul.f32 %v3120_v6, %v3342_v30  ;;  %v781_v19 = vmul.f32 %v3124_v8, %v3342_v30  ;;  %v970_v6 = vmul.f32 %v3114_v60, %v3150_v34  ;;  %v677_v12 = vadd.f32 %v676_v39, %v3110_v55  ;;  %v303_v60 = vld [vmem:[%s3598_s5 + $0x1b8] sm:$0xff] }
 0x2ce   :  { %v2589_v26 = vpack.i.bf16 %v1067_v38, %v878_v53  ;;  %v2594_v43 = vpack.i.bf16 %v971_v52, %v782_v37  ;;  %v3362_v20 = vmax.f32 %v682_v21, 0.0  ;;  %v1069_v8 = vmul.f32 %v3130_v17, %v3342_v30  ;;  %v316_v17 = vld [vmem:[%s3598_s5 + $0x220] sm:$0xff]  ;;  %v1285_v40 = vld [vmem:[%s3602_s6 + $0x18] sm:$0xff]  ;;  %v1287_v53 = vld [vmem:[%s3602_s6 + $0x28] sm:$0xff] }
 0x2cf   :  { %v2599_v3 = vpack.i.bf16 %v1066_v62, %v877_v41  ;;  %v2604_v18 = vpack.i.bf16 %v970_v6, %v781_v19  ;;  %v3381_v13 = vmax.f32 %v677_v12, 0.0  ;;  %v1070_v57 = vmul.f32 %v3187_v54, %v3340_v33  ;;  %v1283_v54 = vld [vmem:[%s3602_s6 + $0x8] sm:$0xff]  ;;  %v319_v39 = vld [vmem:[%s3598_s5 + $0x238] sm:$0xff]  ;;  %v1282_v38 = vld [vmem:[%s3602_s6] sm:$0xff] }
 0x2d0   :  { %2590 = vrot.lane.b32.xlu1 %v2589_v26, %s2647_s17  ;;  %2595 = vrot.lane.b32.xlu0 %v2594_v43, %s2647_s17  ;;  %v880_v2 = vmul.f32 %v3166_v4, %v3362_v20  ;;  %v784_v55 = vmul.f32 %v3181_v49, %v3362_v20  ;;  %v973_v4 = vmul.f32 %v3134_v23, %v3342_v30  ;;  %v317_v23 = vld [vmem:[%s3598_s5 + $0x228] sm:$0xff]  ;;  %v1289_v37 = vld [vmem:[%s3602_s6 + $0x38] sm:$0xff] }
 0x2d1   :  { %v879_v50 = vmul.f32 %v3136_v25, %v3381_v13  ;;  %v1068_v49 = vmul.f32 %v3122_v7, %v3164_v1  ;;  %v975_v42 = vmul.f32 %v3162_v48, %v3381_v13  ;;  %v1071_v25 = vmul.f32 %v3191_v56, %v3381_v13  ;;  %v1284_v52 = vld [vmem:[%s3602_s6 + $0x10] sm:$0xff]  ;;  %v1286_v21 = vld [vmem:[%s3602_s6 + $0x20] sm:$0xff] }
 0x2d2   :  { %v2609_v31 = vpack.i.bf16 %v1069_v8, %v880_v2  ;;  %v2614_v46 = vpack.i.bf16 %v973_v4, %v784_v55  ;;  %v783_v44 = vmul.f32 %v3147_v32, %v3381_v13  ;;  %v972_v7 = vmul.f32 %v3126_v11, %v3164_v1  ;;  %v2114_v11 = vld [vmem:[%s3601_s4 + $0x108] sm:$0xff]   ;;  %v1288_v26 = vld [vmem:[%s3602_s6 + $0x30] sm:$0xff]  ;;  %v321_v43 = vld [vmem:[%s3603_s8] sm:$0xf] }
 0x2d3   :  { %v2619_v45 = vpack.i.bf16 %v1068_v49, %v879_v50  ;;  %v2634_v48 = vpack.i.bf16 %v975_v42, %v1071_v25  ;;  %v976_v56 = vmul.f32 %v3178_v24, %v3362_v20  ;;  %v1072_v32 = vmul.f32 %v3195_v59, %v3362_v20  ;;  %2534 = vmatprep.subr.bf16.mxu1 %v2114_v11  ;;  %v2115_v24 = vld [vmem:[%s3601_s4 + $0x110] sm:$0xff]  }
 0x2d4   :  { %2600 = vrot.lane.b32.xlu1 %v2599_v3, %s2647_s17  ;;  %918 = vperm.xlu0 %2562, %v287_v14   ;;  %v2624_v0 = vpack.i.bf16 %v972_v7, %v783_v44  ;;  %v2629_v16 = vpack.i.bf16 %v974_v5, %v1070_v57  ;;  %v318_v59 = vld [vmem:[%s3598_s5 + $0x230] sm:$0xff]  ;;  %v829_v27 = vmul.f32 %v3271_v51, %v3342_v30 }
 0x2d5   :  { %v2639_v29 = vpack.i.bf16 %v976_v56, %v1072_v32  ;;  %2536 = vmatpush3.bf16.msra.mxu1 %v2114_v11  ;;  %v733_v51 = vmul.f32 %v3275_v63, %v3342_v30  ;;  %v1019_v32 = vmul.f32 %v3279_v28, %v3168_v9  ;;  %v830_v11 = vmul.f32 %v3263_v15, %v3340_v33 }
 0x2d6   :  { %2538 = vmatprep.subr.bf16.mxu1 %v2115_v24  ;;  %v923_v28 = vmul.f32 %v3283_v36, %v3168_v9  ;;  %v734_v15 = vmul.f32 %v3273_v61, %v3340_v33 }
 0x2d8   :  { %1090 = vperm.xlu1 %2563, %v315_v58   ;;  %2605 = vrot.lane.b32.xlu0 %v2604_v18, %s2647_s17 }
 0x2d9   :  { %2540 = vmatpush3.bf16.msra.mxu1 %v2115_v24 }
 0x2da   :  { %2542 = vmatprep.subr.bf16.mxu1 %v2116_v22 }
 0x2dc   :  { %1014 = vperm.xlu1 %2563, %v303_v60   ;;  %2610 = vrot.lane.b32.xlu0 %v2609_v31, %s2647_s17 }
 0x2dd   :  { %2544 = vmatpush3.bf16.msra.mxu1 %v2116_v22 }
 0x2e0   :  { %1095 = vperm.xlu1 %2563, %v316_v17   ;;  %2615 = vrot.lane.b32.xlu0 %v2614_v46, %s2647_s17 }
 0x2e4   :  { %1100 = vperm.xlu1 %2563, %v317_v23   ;;  %2620 = vrot.lane.b32.xlu0 %v2619_v45, %s2647_s17  ;;  %v1018_v23 = vmul.f32 %v3239_v47, %v3150_v34  ;;  %v922_v47 = vmul.f32 %v3252_v10, %v3150_v34 }
 0x2e8   :  { %2635 = vrot.lane.b32.xlu1 %v2634_v48, %s2647_s17  ;;  %2625 = vrot.lane.b32.xlu0 %v2624_v0, %s2647_s17 }
 0x2ec   :  { %2640 = vrot.lane.b32.xlu1 %v2639_v29, %s2647_s17  ;;  %2630 = vrot.lane.b32.xlu0 %v2629_v16, %s2647_s17 }
 0x2f0   :  { %1297 = vperm.xlu1 %2563, %v1283_v54   ;;  %1105 = vperm.xlu0 %2562, %v318_v59  }
 0x2f4   :  { %1307 = vperm.xlu1 %2563, %v1285_v40   ;;  %1110 = vperm.xlu0 %2562, %v319_v39  }
 0x2f8   :  { %1317 = vperm.xlu1 %2563, %v1287_v53   ;;  %1292 = vperm.xlu0 %2562, %v1282_v38  }
 0x2fc   :  { %1327 = vperm.xlu1 %2563, %v1289_v37   ;;  %1302 = vperm.xlu0 %2562, %v1284_v52   ;;  %v3625_v52 = vld [vmem:[#allocation7_spill] sm:$0xff] }
 0x300   :  { %1312 = vperm.xlu0 %2562, %v1286_v21   ;;  %v1020_v21 = vmul.f32 %v3625_v52, %v3164_v1 }
 0x304   :  { %1322 = vperm.xlu0 %2562, %v1288_v26  }
 0x308   :  { %1679 = vperm.xlu0 %2562, %v321_v43  }
 0x322   :  { %v2229_v41 = vpop.f32.mrb[6].mxu1 }
 0x323   :  { %v2230_v62 = vpop.f32.mrb[7].mxu1 }
 0x324   :  { %v3465_v14 = vadd.f32 %v2230_v62, %v2229_v41  ;;  %v3626_v41 = vld [vmem:[#allocation4_spill] sm:$0xff] }
 0x325   :  { %v2285_v3 = vpop.f32.mrb[6].mxu0  ;;  %v831_v61 = vmul.f32 %v3626_v41, %v3381_v13  ;;  %v3638_v41 = vld [vmem:[#allocation18_spill] sm:$0xff] }
 0x326   :  { %v2232_v19 = vpop.f32.mrb[8].mxu1  ;;  %v2286_v6 = vpop.f32.mrb[7].mxu0 }
 0x327   :  { %v3467_v58 = vadd.f32 %v2286_v6, %v2285_v3  ;;  %v2233_v12 = vpop.f32.mrb[9].mxu1 }
 0x328   :  { %v3469_v18 = vadd.f32 %v2233_v12, %v2232_v19 }
 0x32a   :  { %v2235_v2 = vpop.f32.mrb[10].mxu1 }
 0x32b   :  { %v2236_v8 = vpop.f32.mrb[11].mxu1 }
 0x32c   :  { %v3471_v60 = vadd.f32 %v2236_v8, %v2235_v2  ;;  %v3627_v2 = vld [vmem:[#allocation9_spill] sm:$0xff] }
 0x32d   :  { %v924_v8 = vmul.f32 %v3627_v2, %v3164_v1 }
 0x32e   :  { %v2238_v31 = vpop.f32.mrb[12].mxu1 }
 0x32f   :  { %v2239_v55 = vpop.f32.mrb[13].mxu1 }
 0x330   :  { %v3473_v4 = vadd.f32 %v2239_v55, %v2238_v31 }
 0x342   :  { %v2591_v17 = vpop.permute.xlu1 %2590  ;;  %v2596_v25 = vpop.permute.xlu0 %2595 }
 0x343   :  { %v2593_v7 = vunpack.i.h.bf16 %v2591_v17  ;;  %v2592_v5 = vunpack.i.l.bf16 %v2591_v17  ;;  %v2598_v29 = vunpack.i.h.bf16 %v2596_v25  ;;  %v2597_v16 = vunpack.i.l.bf16 %v2596_v25  ;;  %v3628_v17 = vld [vmem:[#allocation5_spill] sm:$0xff] }
 0x345   :  { %v1263_v63 = vsel %vm1249_vm2, %v830_v11, %v2592_v5  ;;  %v1276_v10 = vsel %vm1249_vm2, %v1019_v32, %v2593_v7  ;;  %v1255_v40 = vsel %vm1249_vm2, %v734_v15, %v2597_v16  ;;  %v1268_v39 = vsel %vm1249_vm2, %v923_v28, %v2598_v29  ;;  %v3632_v11 = vld [vmem:[#allocation13_spill] sm:$0xff]  ;;  %v3633_v16 = vld [vmem:[#allocation10_spill] sm:$0xff] }
 0x346   :  { %v2601_v46 = vpop.permute.xlu1 %2600  ;;  %v925_v29 = vmul.f32 %v3632_v11, %v3342_v30 }
 0x347   :  { %v2603_v50 = vunpack.i.h.bf16 %v2601_v46  ;;  %v2602_v49 = vunpack.i.l.bf16 %v2601_v46  ;;  %v735_v46 = vmul.f32 %v3628_v17, %v3381_v13 }
 0x349   :  { %v1262_v45 = vsel %vm1249_vm2, %v829_v27, %v2602_v49  ;;  %v1275_v42 = vsel %vm1249_vm2, %v1018_v23, %v2603_v50  ;;  %v3629_v50 = vld [vmem:[#allocation6_spill] sm:$0xff]  ;;  %v3630_v27 = vld [vmem:[#allocation11_spill] sm:$0xff] }
 0x34a   :  { %1438 = vmatprep.mubr.f32.mxu1 %v1262_v45  ;;  %1528 = vmatprep.mubr.f32.mxu0 %v1275_v42  ;;  %v832_v49 = vmul.f32 %v3629_v50, %v3362_v20  ;;  %v1021_v23 = vmul.f32 %v3630_v27, %v3342_v30 }
 0x353   :  { %v3481_v44 = vpop.permute.xlu0 %918 }
 0x357   :  { %v3483_v57 = vpop.permute.xlu1 %1090  ;;  %v2606_v48 = vpop.permute.xlu0 %2605 }
 0x358   :  { %v2608_v0 = vunpack.i.h.bf16 %v2606_v48  ;;  %v2607_v56 = vunpack.i.l.bf16 %v2606_v48 }
 0x35a   :  { %v1254_v24 = vsel %vm1249_vm2, %v733_v51, %v2607_v56  ;;  %v1267_v54 = vsel %vm1249_vm2, %v922_v47, %v2608_v0  ;;  %v3631_v47 = vld [vmem:[#allocation8_spill] sm:$0xff] }
 0x35b   :  { %v3495_v59 = vpop.permute.xlu1 %1014  ;;  %v2611_v22 = vpop.permute.xlu0 %2610  ;;  %1439 = vmatmul.mubr.f32.gmra.mrb[14].mxu1 %v1254_v24  ;;  %1529 = vmatmul.mubr.f32.gmra.mrb[8].mxu0 %v1267_v54  ;;  %v736_v32 = vmul.f32 %v3631_v47, %v3362_v20  ;;  %v1022_v24 = vmul.f32 %v3633_v16, %v3340_v33  ;;  %v3634_v54 = vld [vmem:[#allocation12_spill] sm:$0xff] }
 0x35c   :  { %1443 = vmatprep.mubr.f32.mxu1 %v1263_v63  ;;  %1533 = vmatprep.mubr.f32.mxu0 %v1276_v10  ;;  %v2613_v19 = vunpack.i.h.bf16 %v2611_v22  ;;  %v2612_v6 = vunpack.i.l.bf16 %v2611_v22  ;;  %v1113_v22 = vmul.f32 %v3634_v54, %v3152_v35  ;;  %v3636_v35 = vld [vmem:[#allocation14_spill] sm:$0xff] }
 0x35e   :  { %v1265_v0 = vsel %vm1249_vm2, %v832_v49, %v2612_v6  ;;  %v1278_v56 = vsel %vm1249_vm2, %v1021_v23, %v2613_v19  ;;  %v928_v49 = vmul.f32 %v3481_v44, %v3362_v20 }
 0x35f   :  { %v3505_v53 = vpop.permute.xlu1 %1095  ;;  %v2616_v38 = vpop.permute.xlu0 %2615  ;;  %1444 = vmatmul.mubr.f32.gmra.mrb[16].mxu1 %v1255_v40  ;;  %1534 = vmatmul.mubr.f32.gmra.mrb[10].mxu0 %v1268_v39 }
 0x360   :  { %v2618_v45 = vunpack.i.h.bf16 %v2616_v38  ;;  %v2617_v42 = vunpack.i.l.bf16 %v2616_v38 }
 0x362   :  { %v1257_v10 = vsel %vm1249_vm2, %v736_v32, %v2617_v42  ;;  %v1270_v28 = vsel %vm1249_vm2, %v925_v29, %v2618_v45 }
 0x363   :  { %v2621_v37 = vpop.permute.xlu0 %2620  ;;  %v3509_v26 = vpop.permute.xlu1 %1100 }
 0x364   :  { %v2623_v36 = vunpack.i.h.bf16 %v2621_v37  ;;  %v2622_v43 = vunpack.i.l.bf16 %v2621_v37  ;;  %v3635_v37 = vld [vmem:[#allocation15_spill] sm:$0xff] }
 0x365   :  { %v926_v52 = vmul.f32 %v3635_v37, %v3340_v33 }
 0x366   :  { %v1264_v62 = vsel %vm1249_vm2, %v831_v61, %v2622_v43  ;;  %v1277_v3 = vsel %vm1249_vm2, %v1020_v21, %v2623_v36  ;;  %v1114_v21 = vmul.f32 %v3636_v35, %v3150_v34  ;;  %v3637_v36 = vld [vmem:[#allocation16_spill] sm:$0xff]  ;;  %v1115_v61 = vmul.f32 %v3638_v41, %v3168_v9  ;;  %v3639_v34 = vld [vmem:[#allocation17_spill] sm:$0xff] }
 0x367   :  { %v2626_v12 = vpop.permute.xlu0 %2625  ;;  %1448 = vmatprep.mubr.f32.mxu1 %v1264_v62  ;;  %1538 = vmatprep.mubr.f32.mxu0 %v1277_v3  ;;  %v2636_v25 = vpop.permute.xlu1 %2635  ;;  %v1023_v43 = vmul.f32 %v3637_v36, %v3381_v13  ;;  %v927_v2 = vmul.f32 %v3639_v34, %v3381_v13  ;;  %v1024_v9 = vmul.f32 %v3495_v59, %v3362_v20 }
 0x368   :  { %v2628_v31 = vunpack.i.h.bf16 %v2626_v12  ;;  %v2627_v55 = vunpack.i.l.bf16 %v2626_v12  ;;  %v2637_v40 = vunpack.i.l.bf16 %v2636_v25  ;;  %v2638_v62 = vunpack.i.h.bf16 %v2636_v25 }
 0x36a   :  { %v1256_v7 = vsel %vm1249_vm2, %v735_v46, %v2627_v55  ;;  %v1269_v5 = vsel %vm1249_vm2, %v924_v8, %v2628_v31  ;;  %v1280_v12 = vsel %vm1249_vm2, %v1023_v43, %v2637_v40  ;;  %v1116_v8 = vmul.f32 %v3483_v57, %v3164_v1 }
 0x36b   :  { %v2631_v48 = vpop.permute.xlu0 %2630  ;;  %1449 = vmatmul.mubr.f32.gmra.mrb[18].mxu1 %v1256_v7  ;;  %1539 = vmatmul.mubr.f32.gmra.mrb[12].mxu0 %v1269_v5  ;;  %v2641_v38 = vpop.permute.xlu1 %2640  ;;  %v1117_v31 = vmul.f32 %v3505_v53, %v3342_v30  ;;  %v1272_v17 = vsel %vm1249_vm2, %v927_v2, %v2638_v62  ;;  %v1118_v30 = vmul.f32 %v3509_v26, %v3340_v33  ;;  %v2650_v33 = vmov 0.0  }
 0x36c   :  { %v2632_v51 = vunpack.i.l.bf16 %v2631_v48  ;;  %1453 = vmatprep.mubr.f32.mxu1 %v1265_v0  ;;  %1543 = vmatprep.mubr.f32.mxu0 %v1278_v56  ;;  %v2633_v63 = vunpack.i.h.bf16 %v2631_v48  ;;  %v2642_v19 = vunpack.i.l.bf16 %v2641_v38  ;;  %v2643_v55 = vunpack.i.h.bf16 %v2641_v38 }
 0x36e   :  { %v1279_v15 = vsel %vm1249_vm2, %v1022_v24, %v2632_v51  ;;  %v1271_v3 = vsel %vm1249_vm2, %v926_v52, %v2633_v63  ;;  %v1281_v50 = vsel %vm1249_vm2, %v1024_v9, %v2642_v19  ;;  %v1273_v59 = vsel %vm1249_vm2, %v928_v49, %v2643_v55 }
 0x36f   :  { %v1106_v39 = vpop.permute.xlu0 %1105  ;;  %1454 = vmatmul.mubr.f32.gmra.mrb[20].mxu1 %v1257_v10  ;;  %1544 = vmatmul.mubr.f32.gmra.mrb[14].mxu0 %v1270_v28 }
 0x370   :  { %1548 = vmatprep.mubr.f32.mxu0 %v1279_v15  ;;  %2367 = vmatprep.mubr.msk.f32.mxu1 %vm1249_vm2, %v1113_v22  ;;  %v1119_v57 = vmul.f32 %v1106_v39, %v3381_v13  ;;  %v1298_v13 = vpop.permute.xlu1 %1297 }
 0x371   :  { %v1426_v45 = vadd.f32 %v3469_v18, %v1298_v13 }
 0x373   :  { %v1111_v6 = vpop.permute.xlu0 %1110  ;;  %1549 = vmatmul.mubr.f32.gmra.mrb[16].mxu0 %v1271_v3  ;;  %2368 = vmatmul.mubr.msk.f32.vlgmr.msra.gmra.mrb[22].mxu1 %vm1249_vm2, %v1114_v21 }
 0x374   :  { %1553 = vmatprep.mubr.f32.mxu0 %v1280_v12  ;;  %2370 = vmatprep.mubr.msk.f32.mxu1 %vm1249_vm2, %v1115_v61  ;;  %v1120_v44 = vmul.f32 %v1111_v6, %v3362_v20  ;;  %v1308_v29 = vpop.permute.xlu1 %1307 }
 0x375   :  { %v1436_v18 = vadd.f32 %v3473_v4, %v1308_v29 }
 0x377   :  { %v1293_v46 = vpop.permute.xlu0 %1292  ;;  %1554 = vmatmul.mubr.f32.gmra.mrb[18].mxu0 %v1272_v17  ;;  %2371 = vmatmul.mubr.msk.f32.gmra.mrb[24].mxu1 %vm1249_vm2, %v1116_v8 }
 0x378   :  { %v1421_v1 = vadd.f32 %v3465_v14, %v1293_v46  ;;  %1558 = vmatprep.mubr.f32.mxu0 %v1281_v50  ;;  %2373 = vmatprep.mubr.msk.f32.mxu1 %vm1249_vm2, %v1117_v31  ;;  %v2648_v14 = vmov 0.0|0.0   ;;  %v1318_v21 = vpop.permute.xlu1 %1317 }
 0x379   :  { %2545 = vmatprep.subr.bf16.mxu0 %v2648_v14 }
 0x37a   :  { %v1526_v53 = vadd.f32 %v3467_v58, %v1421_v1 }
 0x37b   :  { %1559 = vmatmul.mubr.f32.gmra.mrb[20].mxu0 %v1273_v59  ;;  %2374 = vmatmul.mubr.msk.f32.gmra.mrb[26].mxu1 %vm1249_vm2, %v1118_v30  ;;  %v1303_v20 = vpop.permute.xlu0 %1302 }
 0x37c   :  { %2376 = vmatprep.mubr.msk.f32.mxu1 %vm1249_vm2, %v1119_v57  ;;  %2387 = vmatprep.mubr.msk.f32.mxu0 %vm2649_vm3, %v2650_v33  ;;  %v1431_v51 = vadd.f32 %v3471_v60, %v1303_v20  ;;  %v1328_v57 = vpop.permute.xlu1 %1327 }
 0x37f   :  { %2377 = vmatmul.mubr.msk.f32.gmra.mrb[28].mxu1 %vm1249_vm2, %v1120_v44  ;;  %v1313_v28 = vpop.permute.xlu0 %1312 }
 0x383   :  { %v1323_v12 = vpop.permute.xlu0 %1322 }
 0x42e   :  { %v2241_v26 = vpop.f32.mrb[14].mxu1  ;;  %v2288_v58 = vpop.f32.mrb[8].mxu0 }
 0x42f   :  { %v2242_v27 = vpop.f32.mrb[15].mxu1  ;;  %v2289_v23 = vpop.f32.mrb[9].mxu0 }
 0x430   :  { %v2243_v42 = vadd.f32 %v2242_v27, %v2241_v26  ;;  %v2290_v25 = vadd.f32 %v2289_v23, %v2288_v58 }
 0x432   :  { %v2244_v7 = vpop.f32.mrb[16].mxu1  ;;  %v2291_v5 = vpop.f32.mrb[10].mxu0  ;;  %v1531_v48 = vadd.f32 %v2290_v25, %v1426_v45  ;;  %v1441_v52 = vadd.f32 %v2243_v42, %v1313_v28 }
 0x433   :  { %v2245_v0 = vpop.f32.mrb[17].mxu1  ;;  %v2292_v56 = vpop.f32.mrb[11].mxu0 }
 0x434   :  { %v2246_v47 = vadd.f32 %v2245_v0, %v2244_v7  ;;  %v2293_v32 = vadd.f32 %v2292_v56, %v2291_v5  ;;  %v320_v56 = vld [vmem:[%s3604_s7] sm:$0xf] }
 0x436   :  { %v1536_v11 = vadd.f32 %v2293_v32, %v1431_v51  ;;  %v1446_v19 = vadd.f32 %v2246_v47, %v1318_v21 }
 0x43e   :  { %v2247_v16 = vpop.f32.mrb[18].mxu1  ;;  %v2294_v24 = vpop.f32.mrb[12].mxu0 }
 0x43f   :  { %v2248_v54 = vpop.f32.mrb[19].mxu1  ;;  %v2295_v22 = vpop.f32.mrb[13].mxu0 }
 0x440   :  { %v2249_v63 = vadd.f32 %v2248_v54, %v2247_v16  ;;  %v2296_v10 = vadd.f32 %v2295_v22, %v2294_v24  ;;  %v1680_v54 = vpop.permute.xlu0 %1679 }
 0x442   :  { %v2250_v15 = vpop.f32.mrb[20].mxu1  ;;  %v2297_v40 = vpop.f32.mrb[14].mxu0  ;;  %v1541_v39 = vadd.f32 %v2296_v10, %v1436_v18  ;;  %v1451_v50 = vadd.f32 %v2249_v63, %v1323_v12 }
 0x443   :  { %v2251_v38 = vpop.f32.mrb[21].mxu1  ;;  %v2298_v37 = vpop.f32.mrb[15].mxu0 }
 0x444   :  { %v2252_v60 = vadd.f32 %v2251_v38, %v2250_v15  ;;  %v2299_v35 = vadd.f32 %v2298_v37, %v2297_v40  ;;  %v3640_v40 = vld [vmem:[#allocation3_spill] sm:$0xff]  ;;  %v3641_v38 = vld [vmem:[#allocation2_spill] sm:$0xff] }
 0x446   :  { %v2300_v36 = vpop.f32.mrb[16].mxu0  ;;  %v2369_v43 = vpop.f32.mrb[22].mxu1  ;;  %v1546_v41 = vadd.f32 %v2299_v35, %v1441_v52  ;;  %v1456_v45 = vadd.f32 %v2252_v60, %v1328_v57 }
 0x447   :  { %v1636_v61 = vadd.f32 %v2369_v43, %v1531_v48  ;;  %v2301_v62 = vpop.f32.mrb[17].mxu0  ;;  %v1630_v3 = vpop.f32.mrb[23].mxu1 }
 0x448   :  { %v2302_v4 = vadd.f32 %v2301_v62, %v2300_v36  ;;  %v1631_v6 = vadd.f32 %v1630_v3, %v1526_v53 }
 0x449   :  { %v1670_v34 = vmax.f32 %v1636_v61, 0.0 }
 0x44a   :  { %v1669_v2 = vmax.f32 %v1631_v6, 0.0  ;;  %v2303_v8 = vpop.f32.mrb[18].mxu0  ;;  %v2372_v9 = vpop.f32.mrb[24].mxu1  ;;  %v1551_v31 = vadd.f32 %v2302_v4, %v1446_v19 }
 0x44b   :  { %v1646_v55 = vadd.f32 %v2372_v9, %v1541_v39  ;;  %v2304_v17 = vpop.f32.mrb[19].mxu0  ;;  %v1640_v46 = vpop.f32.mrb[25].mxu1 }
 0x44c   :  { %v2546_v49 = vpack.c.bf16 %v1670_v34, %v1669_v2  ;;  %v2305_v1 = vadd.f32 %v2304_v17, %v2303_v8  ;;  %v1641_v30 = vadd.f32 %v1640_v46, %v1536_v11 }
 0x44d   :  { %v1672_v59 = vmax.f32 %v1646_v55, 0.0 }
 0x44e   :  { %v1671_v44 = vmax.f32 %v1641_v30, 0.0  ;;  %v2306_v13 = vpop.f32.mrb[20].mxu0  ;;  %v2375_v26 = vpop.f32.mrb[26].mxu1  ;;  %2547 = vmatpush3.bf16.msra.mxu0 %v2546_v49  ;;  %v1556_v53 = vadd.f32 %v2305_v1, %v1451_v50 }
 0x44f   :  { %v1656_v58 = vadd.f32 %v2375_v26, %v1551_v31  ;;  %v2307_v27 = vpop.f32.mrb[21].mxu0  ;;  %v1650_v23 = vpop.f32.mrb[27].mxu1  ;;  %2548 = vmatprep.subr.bf16.mxu0 %v2648_v14 }
 0x450   :  { %v2549_v42 = vpack.c.bf16 %v1672_v59, %v1671_v44  ;;  %v2308_v25 = vadd.f32 %v2307_v27, %v2306_v13  ;;  %v1651_v20 = vadd.f32 %v1650_v23, %v1546_v41 }
 0x451   :  { %v1674_v7 = vmax.f32 %v1656_v58, 0.0 }
 0x452   :  { %v1673_v5 = vmax.f32 %v1651_v20, 0.0  ;;  %v1561_v48 = vadd.f32 %v2308_v25, %v1456_v45  ;;  %v2378_v0 = vpop.f32.mrb[28].mxu1  ;;  %2550 = vmatpush3.bf16.msra.mxu0 %v2549_v42 }
 0x453   :  { %v1660_v51 = vpop.f32.mrb[29].mxu1  ;;  %2551 = vmatprep.subr.bf16.mxu0 %v2648_v14 }
 0x454   :  { %v2552_v47 = vpack.c.bf16 %v1674_v7, %v1673_v5  ;;  %v1666_v32 = vadd.f32 %v2378_v0, %v1561_v48  ;;  %v1661_v11 = vadd.f32 %v1660_v51, %v1556_v53 }
 0x455   :  { %2388 = vmatmul.mubr.msk.f32.vlgmr.msra.gmra.mrb[22].mxu0 %vm1682_vm4, %v320_v56 }
 0x456   :  { %v1676_v29 = vmax.f32 %v1666_v32, 0.0  ;;  %v1675_v16 = vmax.f32 %v1661_v11, 0.0  ;;  %2553 = vmatpush3.bf16.msra.mxu0 %v2552_v47  ;;  %2398 = vmatprep.mubr.msk.f32.mxu0 %vm2649_vm3, %v2650_v33 }
 0x457   :  { %2554 = vmatprep.subr.bf16.mxu0 %v2648_v14 }
 0x458   :  { %v2555_v24 = vpack.c.bf16 %v1676_v29, %v1675_v16 }
 0x45a   :  { %2556 = vmatpush3.bf16.msra.mxu0 %v2555_v24 }
 0x45d   :  { %2399 = vmatmul.mubr.msk.f32.vlgmr.msra.gmra.mrb[24].mxu0 %vm1682_vm4, %v320_v56 }
 0x528   :  { %v1752_v22 = vpop.f32.mrb[22].mxu0 }
 0x529   :  { %v1753_v18 = vadd.f32 %v1752_v22, %v1680_v54  ;;  %v2389_v63 = vpop.f32.mrb[23].mxu0 }
 0x52b   :  { %v1756_v37 = vadd.f32 %v3641_v38, %v1753_v18 }
 0x530   :  { %v1823_v10 = vpop.f32.mrb[24].mxu0 }
 0x531   :  { %v1824_v28 = vadd.f32 %v1823_v10, %v1680_v54  ;;  %v2400_v15 = vpop.f32.mrb[25].mxu0 }
 0x533   :  { %v1827_v39 = vadd.f32 %v3640_v40, %v1824_v28 }
 0x535   :  { %1829 = vrot.lane.b32.xlu1 %v1827_v39, %s2647_s17 }
 0x5a7   :  { %v1830_v52 = vpop.permute.xlu1 %1829 }
 0x5a8   :  { %v1832_v33 = vsel %vm1249_vm2, %v1756_v37, %v1830_v52 }
 0x5a9   :  { %1833 = vst [vmem:[%s3605_s9] sm:$0xf] %v1832_v33 }

</bundles_post_ra>
